<compile_context>
chip_gen: v7x
topology: tpu7x:2x2x1
jax: 0.10.0
libtpu: 0.0.40
codegen_flags: <defaults>
</compile_context>

<pallas_src>
import math

import jax
import jax.numpy as jnp
from jax.experimental import pallas as pl
from jax.experimental.pallas import tpu as pltpu

_GN_GROUP = 4
_LEAKY_SLOPE = 0.1
_EPS = 1e-5
_K = 3                      # conv / pool kernel size
_C0, _C1 = 8, 32            # fixed intermediate channel counts of LaneEncoderConv
_TB_MAX = 256               # samples per grid step (multiple of 8)


def _round_up(a, b):
    return ((a + b - 1) // b) * b


def _cdiv(a, b):
    return -(-a // b)


# ---------------------------------------------------------------------------
# Wrapper-side constant construction
# ---------------------------------------------------------------------------
def _band_conv_matrix(w, l_in):
    """torch Conv1d weight (Cout, Cin, K) -> block-banded (l_in*Cin, l_out*Cout) bf16.

    With activations lane-flattened as lane = t*Cin + ci, a 'valid' Conv1d over the
    time axis is exactly `x_wide @ Wb`."""
    cout, cin, k = w.shape
    l_out = l_in - (k - 1)
    w_t = jnp.transpose(w, (2, 1, 0)).astype(jnp.float32)      # (k, cin, cout)
    wb = jnp.zeros((l_in * cin, l_out * cout), jnp.float32)
    for t in range(l_out):
        for j in range(k):
            wb = wb.at[(t + j) * cin:(t + j + 1) * cin,
                       t * cout:(t + 1) * cout].set(w_t[j])
    return wb.astype(jnp.bfloat16)


def _gn_reduce_matrix(cout, l_out):
    """(l_out*cout, cout) f32 M s.t. y_wide @ M gives, per channel, the mean of its
    GroupNorm group taken over (channels_in_group x l_out)."""
    cg = cout // _GN_GROUP
    c = jnp.arange(cout)
    same = (c[:, None] // cg) == (c[None, :] // cg)
    blk = same.astype(jnp.float32) / float(l_out * cg)
    return jnp.tile(blk, (l_out, 1))


def _expand_matrix(cout, l_out):
    """(cout, l_out*cout) bf16 0/1 matrix replicating per-channel values onto the
    lane-flattened (t*cout + c) layout: per_channel @ E == wide."""
    return jnp.tile(jnp.eye(cout, dtype=jnp.float32), (1, l_out)).astype(jnp.bfloat16)


# ---------------------------------------------------------------------------
# Pallas kernel
# ---------------------------------------------------------------------------
def _make_kernel(L, enc, out_w_pad):
    lp = L - 8
    off1 = _C0
    off2 = _C0 + _C1
    out_w = lp * enc

    def gn_leaky(y, r_ref, e_ref, gamma, beta):
        """GroupNorm(4) + LeakyReLU on a lane-flattened (TB, l_out*cout) f32 slab."""
        r = r_ref[...]                                                  # (W, cout) f32
        mean_c = jnp.dot(y, r, preferred_element_type=jnp.float32)      # (TB, cout)
        ex2_c = jnp.dot(y * y, r, preferred_element_type=jnp.float32)   # (TB, cout)
        var_c = jnp.maximum(ex2_c - mean_c * mean_c, 0.0)               # guard cancellation
        scale_c = gamma * jax.lax.rsqrt(var_c + _EPS)                   # (TB, cout)
        shift_c = beta - mean_c * scale_c                               # (TB, cout)
        e = e_ref[...]                                                  # (cout, W) bf16 0/1
        scale_w = jnp.dot(scale_c.astype(jnp.bfloat16), e,
                          preferred_element_type=jnp.float32)           # (TB, W)
        shift_w = jnp.dot(shift_c.astype(jnp.bfloat16), e,
                          preferred_element_type=jnp.float32)           # (TB, W)
        z = y * scale_w + shift_w
        return jnp.maximum(z, _LEAKY_SLOPE * z)                         # LeakyReLU

    def kernel(x_ref, w0_ref, r0_ref, e0_ref, w1_ref, r1_ref, e1_ref,
               w2_ref, r2_ref, e2_ref, gb_ref, o_ref):
        x = x_ref[...].astype(jnp.bfloat16)                             # (TB, L*2)

        # Block 0: Conv1d(2->8) + GN + LeakyReLU
        y0 = jnp.dot(x, w0_ref[...], preferred_element_type=jnp.float32)
        h0 = gn_leaky(y0, r0_ref, e0_ref, gb_ref[0:1, 0:off1], gb_ref[1:2, 0:off1])

        # Block 1: Conv1d(8->32) + GN + LeakyReLU
        y1 = jnp.dot(h0.astype(jnp.bfloat16), w1_ref[...],
                     preferred_element_type=jnp.float32)
        h1 = gn_leaky(y1, r1_ref, e1_ref, gb_ref[0:1, off1:off2],
                      gb_ref[1:2, off1:off2])

        # Block 2: Conv1d(32->enc) + GN + LeakyReLU
        y2 = jnp.dot(h1.astype(jnp.bfloat16), w2_ref[...],
                     preferred_element_type=jnp.float32)
        h2 = gn_leaky(y2, r2_ref, e2_ref, gb_ref[0:1, off2:off2 + enc],
                      gb_ref[1:2, off2:off2 + enc])

        # AvgPool1d(kernel=3, stride=1) along time, directly on the lane-flattened
        # layout; the result is the lane-dense (TB, (L-8)*enc) output slab.
        pooled = (h2[:, 0:out_w] + h2[:, enc:enc + out_w] +
                  h2[:, 2 * enc:2 * enc + out_w]) * (1.0 / 3.0)
        if out_w_pad != out_w:   # keep the stored slab lane-dense (unmasked stores)
            pad = jnp.zeros((pooled.shape[0], out_w_pad - out_w), pooled.dtype)
            pooled = jnp.concatenate([pooled, pad], axis=-1)
        o_ref[...] = pooled

    return kernel


# ---------------------------------------------------------------------------
# Wrapper
# ---------------------------------------------------------------------------
def _pick_tb(n):
    """Batch-tile size: multiple of 8, <= _TB_MAX, >= 2 grid steps when n >= 16
    (so the 'parallel' batch axis shards across v7x's two TensorCores), and sized
    to minimize padding of the last tile."""
    steps = max(2, _cdiv(n, _TB_MAX)) if n >= 16 else 1
    tb = _round_up(_cdiv(n, steps), 8)
    return min(tb, _round_up(n, 8), _TB_MAX)


def lane_encoder_conv(x, params):
    """x: (N, L, 2) float32 -> (N, L-8, enc_size) float32 (LaneEncoderConv.forward)."""
    N, L, two = x.shape
    assert two == 2
    assert 9 <= L <= 64, "banded-matmul formulation targets short lane polylines"
    enc = params["w2"].shape[0]
    assert enc % _GN_GROUP == 0
    lp = L - 8

    # TODO(synk): for L >~ 32 (esp. v5e) switch the convs to the dense-tap form
    # (rows = TB*l_out, three (cin,cout) matmuls accumulated over taps) to drop the
    # ~L/3x zero-MAC inflation and the O(L^2) banded weight.
    w0 = _band_conv_matrix(params["w0"], L)            # (L*2,      (L-2)*8)   bf16
    w1 = _band_conv_matrix(params["w1"], L - 2)        # ((L-2)*8,  (L-4)*32)  bf16
    w2 = _band_conv_matrix(params["w2"], L - 4)        # ((L-4)*32, (L-6)*enc) bf16
    r0 = _gn_reduce_matrix(_C0, L - 2)                 # f32 group-mean reducers
    r1 = _gn_reduce_matrix(_C1, L - 4)
    r2 = _gn_reduce_matrix(enc, L - 6)
    e0 = _expand_matrix(_C0, L - 2)                    # bf16 0/1 channel->lane expanders
    e1 = _expand_matrix(_C1, L - 4)
    e2 = _expand_matrix(enc, L - 6)

    # gamma/beta of the three GroupNorms packed into one (2, Ctot) constant operand.
    c_tot = _C0 + _C1 + enc
    gb = jnp.zeros((2, c_tot), jnp.float32)
    gb = gb.at[0, 0:_C0].set(params["g0"].astype(jnp.float32))
    gb = gb.at[1, 0:_C0].set(params["b0"].astype(jnp.float32))
    gb = gb.at[0, _C0:_C0 + _C1].set(params["g1"].astype(jnp.float32))
    gb = gb.at[1, _C0:_C0 + _C1].set(params["b1"].astype(jnp.float32))
    gb = gb.at[0, _C0 + _C1:c_tot].set(params["g2"].astype(jnp.float32))
    gb = gb.at[1, _C0 + _C1:c_tot].set(params["b2"].astype(jnp.float32))

    # Batch tiling (padded rows are independent of real ones and sliced away).
    tb = _pick_tb(N)
    n_pad = _round_up(N, tb)
    x2d = x.reshape(N, L * 2).astype(jnp.float32)
    if n_pad != N:
        x2d = jnp.pad(x2d, ((0, n_pad - N), (0, 0)))

    out_w = lp * enc
    out_w_pad = out_w if out_w % 128 == 0 else _round_up(out_w, 128)

    # TODO(synk): mark the constant operands single-buffered (pipeline_mode=
    # pl.Buffered(1)) once confirmed supported by pallas_call on this jax version;
    # with bf16 weights and tb<=256 they comfortably fit even double-buffered.
    def const_spec(arr):
        return pl.BlockSpec(arr.shape, lambda i: (0, 0))

    out_flat = pl.pallas_call(
        _make_kernel(L, enc, out_w_pad),
        out_shape=jax.ShapeDtypeStruct((n_pad, out_w_pad), jnp.float32),
        grid_spec=pltpu.PrefetchScalarGridSpec(
            num_scalar_prefetch=0,
            grid=(n_pad // tb,),
            in_specs=[pl.BlockSpec((tb, L * 2), lambda i: (i, 0)),
                      const_spec(w0), const_spec(r0), const_spec(e0),
                      const_spec(w1), const_spec(r1), const_spec(e1),
                      const_spec(w2), const_spec(r2), const_spec(e2),
                      const_spec(gb)],
            out_specs=pl.BlockSpec((tb, out_w_pad), lambda i: (i, 0)),
        ),
        compiler_params=pltpu.CompilerParams(
            dimension_semantics=("parallel",),
            vmem_limit_bytes=48 * 1024 * 1024),
    )(x2d, w0, r0, e0, w1, r1, e1, w2, r2, e2, gb)

    return out_flat[:N, :out_w].reshape(N, lp, enc)


# ---------------------------------------------------------------------------
# Pure-JAX reference (mirrors the PyTorch NCL semantics, f32 throughout)
# ---------------------------------------------------------------------------
def _ref_block(x_ncl, w, gamma, beta):
    y = jax.lax.conv_general_dilated(
        x_ncl, w, window_strides=(1,), padding="VALID",
        dimension_numbers=("NCH", "OIH", "NCH"))
    N, C, Lc = y.shape
    Cg = C // _GN_GROUP
    yg = y.reshape(N, _GN_GROUP, Cg, Lc)
    m = yg.mean(axis=(2, 3), keepdims=True)
    v = ((yg - m) ** 2).mean(axis=(2, 3), keepdims=True)
    yn = ((yg - m) / jnp.sqrt(v + _EPS)).reshape(N, C, Lc)
    z = yn * gamma[None, :, None] + beta[None, :, None]
    return jnp.where(z >= 0, z, _LEAKY_SLOPE * z)


def lane_encoder_conv_ref(x, params):
    h = jnp.transpose(x, (0, 2, 1))  # (N, 2, L)
    h = _ref_block(h, params["w0"], params["g0"], params["b0"])
    h = _ref_block(h, params["w1"], params["g1"], params["b1"])
    h = _ref_block(h, params["w2"], params["g2"], params["b2"])
    p = (h[:, :, 0:-2] + h[:, :, 1:-1] + h[:, :, 2:]) / 3.0  # AvgPool1d(3, 1)
    return jnp.transpose(p, (0, 2, 1))


# ---------------------------------------------------------------------------
if __name__ == "__main__":
    N, L, enc_size = 2, 16, 32

    key = jax.random.PRNGKey(0)
    ks = jax.random.split(key, 10)

    def conv_w(k, cout, cin):
        bound = 1.0 / math.sqrt(cin * _K)
        return jax.random.uniform(k, (cout, cin, _K), jnp.float32, -bound, bound)

    params = {
        "w0": conv_w(ks[0], 8, 2),
        "g0": jax.random.uniform(ks[1], (8,), jnp.float32, 0.5, 1.5),
        "b0": jax.random.uniform(ks[2], (8,), jnp.float32, -0.1, 0.1),
        "w1": conv_w(ks[3], 32, 8),
        "g1": jax.random.uniform(ks[4], (32,), jnp.float32, 0.5, 1.5),
        "b1": jax.random.uniform(ks[5], (32,), jnp.float32, -0.1, 0.1),
        "w2": conv_w(ks[6], enc_size, 32),
        "g2": jax.random.uniform(ks[7], (enc_size,), jnp.float32, 0.5, 1.5),
        "b2": jax.random.uniform(ks[8], (enc_size,), jnp.float32, -0.1, 0.1),
    }

    x = jax.random.normal(ks[9], (N, L, 2), jnp.float32)

    out = jax.block_until_ready(lane_encoder_conv(x, params))
    ref = jax.block_until_ready(lane_encoder_conv_ref(x, params))

    assert out.shape == (N, L - 8, enc_size), out.shape
    # bf16 MXU operands (f32 accumulation) vs f32 reference -> loosened tolerance.
    assert jnp.allclose(out, ref, rtol=5e-2, atol=5e-2), float(jnp.max(jnp.abs(out - ref)))

    print("KERNEL_OK")
</pallas_src>

<mosaic_0001>
module attributes {stable_mosaic.version = 11 : i64} {
  func.func @kernel(%arg0: i32, %arg1: memref<8x32xf32, #tpu.memory_space<vmem>>, %arg2: memref<32x112xbf16, #tpu.memory_space<vmem>>, %arg3: memref<112x8xf32, #tpu.memory_space<vmem>>, %arg4: memref<8x112xbf16, #tpu.memory_space<vmem>>, %arg5: memref<112x384xbf16, #tpu.memory_space<vmem>>, %arg6: memref<384x32xf32, #tpu.memory_space<vmem>>, %arg7: memref<32x384xbf16, #tpu.memory_space<vmem>>, %arg8: memref<384x320xbf16, #tpu.memory_space<vmem>>, %arg9: memref<320x32xf32, #tpu.memory_space<vmem>>, %arg10: memref<32x320xbf16, #tpu.memory_space<vmem>>, %arg11: memref<2x72xf32, #tpu.memory_space<vmem>>, %arg12: memref<8x256xf32, #tpu.memory_space<vmem>>) attributes {dimension_semantics = [#tpu.dimension_semantics<parallel>], iteration_bounds = array<i64: 1>, scalar_prefetch = 0 : i64, scratch_operands = 0 : i64, tpu.core_type = #tpu.core_type<tc>, window_params = [{transform_indices = @transform_0, window_bounds = array<i64: 8, 32>}, {pipeline_mode = #tpu.pipeline_mode<synchronous>, transform_indices = @transform_1, window_bounds = array<i64: 32, 112>}, {pipeline_mode = #tpu.pipeline_mode<synchronous>, transform_indices = @transform_2, window_bounds = array<i64: 112, 8>}, {pipeline_mode = #tpu.pipeline_mode<synchronous>, transform_indices = @transform_3, window_bounds = array<i64: 8, 112>}, {pipeline_mode = #tpu.pipeline_mode<synchronous>, transform_indices = @transform_4, window_bounds = array<i64: 112, 384>}, {pipeline_mode = #tpu.pipeline_mode<synchronous>, transform_indices = @transform_5, window_bounds = array<i64: 384, 32>}, {pipeline_mode = #tpu.pipeline_mode<synchronous>, transform_indices = @transform_6, window_bounds = array<i64: 32, 384>}, {pipeline_mode = #tpu.pipeline_mode<synchronous>, transform_indices = @transform_7, window_bounds = array<i64: 384, 320>}, {pipeline_mode = #tpu.pipeline_mode<synchronous>, transform_indices = @transform_8, window_bounds = array<i64: 320, 32>}, {pipeline_mode = #tpu.pipeline_mode<synchronous>, transform_indices = @transform_9, window_bounds = array<i64: 32, 320>}, {pipeline_mode = #tpu.pipeline_mode<synchronous>, transform_indices = @transform_10, window_bounds = array<i64: 2, 72>}, {transform_indices = @transform_11, window_bounds = array<i64: 8, 256>}]} {
    %c0 = arith.constant 0 : index
    %c0_0 = arith.constant 0 : index
    %0 = vector.load %arg1[%c0, %c0_0] : memref<8x32xf32, #tpu.memory_space<vmem>>, vector<8x32xf32>
    %1 = arith.truncf %0 : vector<8x32xf32> to vector<8x32xbf16>
    %c0_1 = arith.constant 0 : index
    %c0_2 = arith.constant 0 : index
    %2 = vector.load %arg2[%c0_1, %c0_2] : memref<32x112xbf16, #tpu.memory_space<vmem>>, vector<32x112xbf16>
    %cst = arith.constant dense<0.000000e+00> : vector<8x112xf32>
    %3 = tpu.matmul %1, %2, %cst {dimension_numbers = #tpu.dot_dimension_numbers<[1], [0], [0], [1], [0, 0, 1, 1], [], []>} : vector<8x32xbf16>, vector<32x112xbf16>, vector<8x112xf32> -> vector<8x112xf32>
    %c0_3 = arith.constant 0 : index
    %c0_4 = arith.constant 0 : index
    %4 = vector.load %arg11[%c0_3, %c0_4] : memref<2x72xf32, #tpu.memory_space<vmem>>, vector<1x8xf32>
    %c1 = arith.constant 1 : index
    %c0_5 = arith.constant 0 : index
    %5 = vector.load %arg11[%c1, %c0_5] : memref<2x72xf32, #tpu.memory_space<vmem>>, vector<1x8xf32>
    %c0_6 = arith.constant 0 : index
    %c0_7 = arith.constant 0 : index
    %6 = vector.load %arg3[%c0_6, %c0_7] : memref<112x8xf32, #tpu.memory_space<vmem>>, vector<112x8xf32>
    %cst_8 = arith.constant dense<0.000000e+00> : vector<8x8xf32>
    %7 = tpu.matmul %3, %6, %cst_8 {dimension_numbers = #tpu.dot_dimension_numbers<[1], [0], [0], [1], [0, 0, 1, 1], [], []>} : vector<8x112xf32>, vector<112x8xf32>, vector<8x8xf32> -> vector<8x8xf32>
    %8 = arith.mulf %3, %3 : vector<8x112xf32>
    %cst_9 = arith.constant dense<0.000000e+00> : vector<8x8xf32>
    %9 = tpu.matmul %8, %6, %cst_9 {dimension_numbers = #tpu.dot_dimension_numbers<[1], [0], [0], [1], [0, 0, 1, 1], [], []>} : vector<8x112xf32>, vector<112x8xf32>, vector<8x8xf32> -> vector<8x8xf32>
    %10 = arith.mulf %7, %7 : vector<8x8xf32>
    %11 = arith.subf %9, %10 : vector<8x8xf32>
    %cst_10 = arith.constant 0.000000e+00 : f32
    %12 = vector.broadcast %cst_10 : f32 to vector<8x8xf32>
    %13 = arith.maximumf %11, %12 : vector<8x8xf32>
    %cst_11 = arith.constant 9.99999974E-6 : f32
    %14 = vector.broadcast %cst_11 : f32 to vector<8x8xf32>
    %15 = arith.addf %13, %14 : vector<8x8xf32>
    %16 = math.rsqrt %15 : vector<8x8xf32>
    %17 = vector.broadcast %4 : vector<1x8xf32> to vector<8x8xf32>
    %18 = arith.mulf %17, %16 : vector<8x8xf32>
    %19 = arith.mulf %7, %18 : vector<8x8xf32>
    %20 = vector.broadcast %5 : vector<1x8xf32> to vector<8x8xf32>
    %21 = arith.subf %20, %19 : vector<8x8xf32>
    %c0_12 = arith.constant 0 : index
    %c0_13 = arith.constant 0 : index
    %22 = vector.load %arg4[%c0_12, %c0_13] : memref<8x112xbf16, #tpu.memory_space<vmem>>, vector<8x112xbf16>
    %23 = arith.truncf %18 : vector<8x8xf32> to vector<8x8xbf16>
    %cst_14 = arith.constant dense<0.000000e+00> : vector<8x112xf32>
    %24 = tpu.matmul %23, %22, %cst_14 {dimension_numbers = #tpu.dot_dimension_numbers<[1], [0], [0], [1], [0, 0, 1, 1], [], []>} : vector<8x8xbf16>, vector<8x112xbf16>, vector<8x112xf32> -> vector<8x112xf32>
    %25 = arith.truncf %21 : vector<8x8xf32> to vector<8x8xbf16>
    %cst_15 = arith.constant dense<0.000000e+00> : vector<8x112xf32>
    %26 = tpu.matmul %25, %22, %cst_15 {dimension_numbers = #tpu.dot_dimension_numbers<[1], [0], [0], [1], [0, 0, 1, 1], [], []>} : vector<8x8xbf16>, vector<8x112xbf16>, vector<8x112xf32> -> vector<8x112xf32>
    %27 = arith.mulf %3, %24 : vector<8x112xf32>
    %28 = arith.addf %27, %26 : vector<8x112xf32>
    %cst_16 = arith.constant 1.000000e-01 : f32
    %29 = vector.broadcast %cst_16 : f32 to vector<8x112xf32>
    %30 = arith.mulf %29, %28 : vector<8x112xf32>
    %31 = arith.maximumf %28, %30 : vector<8x112xf32>
    %32 = arith.truncf %31 : vector<8x112xf32> to vector<8x112xbf16>
    %c0_17 = arith.constant 0 : index
    %c0_18 = arith.constant 0 : index
    %33 = vector.load %arg5[%c0_17, %c0_18] : memref<112x384xbf16, #tpu.memory_space<vmem>>, vector<112x384xbf16>
    %cst_19 = arith.constant dense<0.000000e+00> : vector<8x384xf32>
    %34 = tpu.matmul %32, %33, %cst_19 {dimension_numbers = #tpu.dot_dimension_numbers<[1], [0], [0], [1], [0, 0, 1, 1], [], []>} : vector<8x112xbf16>, vector<112x384xbf16>, vector<8x384xf32> -> vector<8x384xf32>
    %c0_20 = arith.constant 0 : index
    %c8 = arith.constant 8 : index
    %35 = vector.load %arg11[%c0_20, %c8] : memref<2x72xf32, #tpu.memory_space<vmem>>, vector<1x32xf32>
    %c1_21 = arith.constant 1 : index
    %c8_22 = arith.constant 8 : index
    %36 = vector.load %arg11[%c1_21, %c8_22] : memref<2x72xf32, #tpu.memory_space<vmem>>, vector<1x32xf32>
    %c0_23 = arith.constant 0 : index
    %c0_24 = arith.constant 0 : index
    %37 = vector.load %arg6[%c0_23, %c0_24] : memref<384x32xf32, #tpu.memory_space<vmem>>, vector<384x32xf32>
    %cst_25 = arith.constant dense<0.000000e+00> : vector<8x32xf32>
    %38 = tpu.matmul %34, %37, %cst_25 {dimension_numbers = #tpu.dot_dimension_numbers<[1], [0], [0], [1], [0, 0, 1, 1], [], []>} : vector<8x384xf32>, vector<384x32xf32>, vector<8x32xf32> -> vector<8x32xf32>
    %39 = arith.mulf %34, %34 : vector<8x384xf32>
    %cst_26 = arith.constant dense<0.000000e+00> : vector<8x32xf32>
    %40 = tpu.matmul %39, %37, %cst_26 {dimension_numbers = #tpu.dot_dimension_numbers<[1], [0], [0], [1], [0, 0, 1, 1], [], []>} : vector<8x384xf32>, vector<384x32xf32>, vector<8x32xf32> -> vector<8x32xf32>
    %41 = arith.mulf %38, %38 : vector<8x32xf32>
    %42 = arith.subf %40, %41 : vector<8x32xf32>
    %cst_27 = arith.constant 0.000000e+00 : f32
    %43 = vector.broadcast %cst_27 : f32 to vector<8x32xf32>
    %44 = arith.maximumf %42, %43 : vector<8x32xf32>
    %cst_28 = arith.constant 9.99999974E-6 : f32
    %45 = vector.broadcast %cst_28 : f32 to vector<8x32xf32>
    %46 = arith.addf %44, %45 : vector<8x32xf32>
    %47 = math.rsqrt %46 : vector<8x32xf32>
    %48 = vector.broadcast %35 : vector<1x32xf32> to vector<8x32xf32>
    %49 = arith.mulf %48, %47 : vector<8x32xf32>
    %50 = arith.mulf %38, %49 : vector<8x32xf32>
    %51 = vector.broadcast %36 : vector<1x32xf32> to vector<8x32xf32>
    %52 = arith.subf %51, %50 : vector<8x32xf32>
    %c0_29 = arith.constant 0 : index
    %c0_30 = arith.constant 0 : index
    %53 = vector.load %arg7[%c0_29, %c0_30] : memref<32x384xbf16, #tpu.memory_space<vmem>>, vector<32x384xbf16>
    %54 = arith.truncf %49 : vector<8x32xf32> to vector<8x32xbf16>
    %cst_31 = arith.constant dense<0.000000e+00> : vector<8x384xf32>
    %55 = tpu.matmul %54, %53, %cst_31 {dimension_numbers = #tpu.dot_dimension_numbers<[1], [0], [0], [1], [0, 0, 1, 1], [], []>} : vector<8x32xbf16>, vector<32x384xbf16>, vector<8x384xf32> -> vector<8x384xf32>
    %56 = arith.truncf %52 : vector<8x32xf32> to vector<8x32xbf16>
    %cst_32 = arith.constant dense<0.000000e+00> : vector<8x384xf32>
    %57 = tpu.matmul %56, %53, %cst_32 {dimension_numbers = #tpu.dot_dimension_numbers<[1], [0], [0], [1], [0, 0, 1, 1], [], []>} : vector<8x32xbf16>, vector<32x384xbf16>, vector<8x384xf32> -> vector<8x384xf32>
    %58 = arith.mulf %34, %55 : vector<8x384xf32>
    %59 = arith.addf %58, %57 : vector<8x384xf32>
    %cst_33 = arith.constant 1.000000e-01 : f32
    %60 = vector.broadcast %cst_33 : f32 to vector<8x384xf32>
    %61 = arith.mulf %60, %59 : vector<8x384xf32>
    %62 = arith.maximumf %59, %61 : vector<8x384xf32>
    %63 = arith.truncf %62 : vector<8x384xf32> to vector<8x384xbf16>
    %c0_34 = arith.constant 0 : index
    %c0_35 = arith.constant 0 : index
    %64 = vector.load %arg8[%c0_34, %c0_35] : memref<384x320xbf16, #tpu.memory_space<vmem>>, vector<384x320xbf16>
    %cst_36 = arith.constant dense<0.000000e+00> : vector<8x320xf32>
    %65 = tpu.matmul %63, %64, %cst_36 {dimension_numbers = #tpu.dot_dimension_numbers<[1], [0], [0], [1], [0, 0, 1, 1], [], []>} : vector<8x384xbf16>, vector<384x320xbf16>, vector<8x320xf32> -> vector<8x320xf32>
    %c0_37 = arith.constant 0 : index
    %c40 = arith.constant 40 : index
    %66 = vector.load %arg11[%c0_37, %c40] : memref<2x72xf32, #tpu.memory_space<vmem>>, vector<1x32xf32>
    %c1_38 = arith.constant 1 : index
    %c40_39 = arith.constant 40 : index
    %67 = vector.load %arg11[%c1_38, %c40_39] : memref<2x72xf32, #tpu.memory_space<vmem>>, vector<1x32xf32>
    %c0_40 = arith.constant 0 : index
    %c0_41 = arith.constant 0 : index
    %68 = vector.load %arg9[%c0_40, %c0_41] : memref<320x32xf32, #tpu.memory_space<vmem>>, vector<320x32xf32>
    %cst_42 = arith.constant dense<0.000000e+00> : vector<8x32xf32>
    %69 = tpu.matmul %65, %68, %cst_42 {dimension_numbers = #tpu.dot_dimension_numbers<[1], [0], [0], [1], [0, 0, 1, 1], [], []>} : vector<8x320xf32>, vector<320x32xf32>, vector<8x32xf32> -> vector<8x32xf32>
    %70 = arith.mulf %65, %65 : vector<8x320xf32>
    %cst_43 = arith.constant dense<0.000000e+00> : vector<8x32xf32>
    %71 = tpu.matmul %70, %68, %cst_43 {dimension_numbers = #tpu.dot_dimension_numbers<[1], [0], [0], [1], [0, 0, 1, 1], [], []>} : vector<8x320xf32>, vector<320x32xf32>, vector<8x32xf32> -> vector<8x32xf32>
    %72 = arith.mulf %69, %69 : vector<8x32xf32>
    %73 = arith.subf %71, %72 : vector<8x32xf32>
    %cst_44 = arith.constant 0.000000e+00 : f32
    %74 = vector.broadcast %cst_44 : f32 to vector<8x32xf32>
    %75 = arith.maximumf %73, %74 : vector<8x32xf32>
    %cst_45 = arith.constant 9.99999974E-6 : f32
    %76 = vector.broadcast %cst_45 : f32 to vector<8x32xf32>
    %77 = arith.addf %75, %76 : vector<8x32xf32>
    %78 = math.rsqrt %77 : vector<8x32xf32>
    %79 = vector.broadcast %66 : vector<1x32xf32> to vector<8x32xf32>
    %80 = arith.mulf %79, %78 : vector<8x32xf32>
    %81 = arith.mulf %69, %80 : vector<8x32xf32>
    %82 = vector.broadcast %67 : vector<1x32xf32> to vector<8x32xf32>
    %83 = arith.subf %82, %81 : vector<8x32xf32>
    %c0_46 = arith.constant 0 : index
    %c0_47 = arith.constant 0 : index
    %84 = vector.load %arg10[%c0_46, %c0_47] : memref<32x320xbf16, #tpu.memory_space<vmem>>, vector<32x320xbf16>
    %85 = arith.truncf %80 : vector<8x32xf32> to vector<8x32xbf16>
    %cst_48 = arith.constant dense<0.000000e+00> : vector<8x320xf32>
    %86 = tpu.matmul %85, %84, %cst_48 {dimension_numbers = #tpu.dot_dimension_numbers<[1], [0], [0], [1], [0, 0, 1, 1], [], []>} : vector<8x32xbf16>, vector<32x320xbf16>, vector<8x320xf32> -> vector<8x320xf32>
    %87 = arith.truncf %83 : vector<8x32xf32> to vector<8x32xbf16>
    %cst_49 = arith.constant dense<0.000000e+00> : vector<8x320xf32>
    %88 = tpu.matmul %87, %84, %cst_49 {dimension_numbers = #tpu.dot_dimension_numbers<[1], [0], [0], [1], [0, 0, 1, 1], [], []>} : vector<8x32xbf16>, vector<32x320xbf16>, vector<8x320xf32> -> vector<8x320xf32>
    %89 = arith.mulf %65, %86 : vector<8x320xf32>
    %90 = arith.addf %89, %88 : vector<8x320xf32>
    %cst_50 = arith.constant 1.000000e-01 : f32
    %91 = vector.broadcast %cst_50 : f32 to vector<8x320xf32>
    %92 = arith.mulf %91, %90 : vector<8x320xf32>
    %93 = arith.maximumf %90, %92 : vector<8x320xf32>
    %94 = vector.extract_strided_slice %93 {offsets = [0, 0], sizes = [8, 256], strides = [1, 1]} : vector<8x320xf32> to vector<8x256xf32>
    %95 = vector.extract_strided_slice %93 {offsets = [0, 32], sizes = [8, 256], strides = [1, 1]} : vector<8x320xf32> to vector<8x256xf32>
    %96 = arith.addf %94, %95 : vector<8x256xf32>
    %97 = vector.extract_strided_slice %93 {offsets = [0, 64], sizes = [8, 256], strides = [1, 1]} : vector<8x320xf32> to vector<8x256xf32>
    %98 = arith.addf %96, %97 : vector<8x256xf32>
    %cst_51 = arith.constant 0.333333343 : f32
    %99 = vector.broadcast %cst_51 : f32 to vector<8x256xf32>
    %100 = arith.mulf %98, %99 : vector<8x256xf32>
    %c0_52 = arith.constant 0 : index
    %c0_53 = arith.constant 0 : index
    %101 = vector.load %arg12[%c0_52, %c0_53] : memref<8x256xf32, #tpu.memory_space<vmem>>, vector<8x256xf32>
    tpu.vector_store %arg12[%c0_52, %c0_53], %100 {strides = array<i32>} : memref<8x256xf32, #tpu.memory_space<vmem>>, vector<8x256xf32>,
    return
  }
  func.func @transform_0(%arg0: i32) -> (i32, i32) {
    %c0_i32 = arith.constant 0 : i32
    %c0_i32_0 = arith.constant 0 : i32
    return %arg0, %c0_i32 : i32, i32
  }
  func.func @transform_1(%arg0: i32) -> (i32, i32) {
    %c0_i32 = arith.constant 0 : i32
    %c0_i32_0 = arith.constant 0 : i32
    %c0_i32_1 = arith.constant 0 : i32
    return %c0_i32, %c0_i32_0 : i32, i32
  }
  func.func @transform_2(%arg0: i32) -> (i32, i32) {
    %c0_i32 = arith.constant 0 : i32
    %c0_i32_0 = arith.constant 0 : i32
    %c0_i32_1 = arith.constant 0 : i32
    return %c0_i32, %c0_i32_0 : i32, i32
  }
  func.func @transform_3(%arg0: i32) -> (i32, i32) {
    %c0_i32 = arith.constant 0 : i32
    %c0_i32_0 = arith.constant 0 : i32
    %c0_i32_1 = arith.constant 0 : i32
    return %c0_i32, %c0_i32_0 : i32, i32
  }
  func.func @transform_4(%arg0: i32) -> (i32, i32) {
    %c0_i32 = arith.constant 0 : i32
    %c0_i32_0 = arith.constant 0 : i32
    %c0_i32_1 = arith.constant 0 : i32
    return %c0_i32, %c0_i32_0 : i32, i32
  }
  func.func @transform_5(%arg0: i32) -> (i32, i32) {
    %c0_i32 = arith.constant 0 : i32
    %c0_i32_0 = arith.constant 0 : i32
    %c0_i32_1 = arith.constant 0 : i32
    return %c0_i32, %c0_i32_0 : i32, i32
  }
  func.func @transform_6(%arg0: i32) -> (i32, i32) {
    %c0_i32 = arith.constant 0 : i32
    %c0_i32_0 = arith.constant 0 : i32
    %c0_i32_1 = arith.constant 0 : i32
    return %c0_i32, %c0_i32_0 : i32, i32
  }
  func.func @transform_7(%arg0: i32) -> (i32, i32) {
    %c0_i32 = arith.constant 0 : i32
    %c0_i32_0 = arith.constant 0 : i32
    %c0_i32_1 = arith.constant 0 : i32
    return %c0_i32, %c0_i32_0 : i32, i32
  }
  func.func @transform_8(%arg0: i32) -> (i32, i32) {
    %c0_i32 = arith.constant 0 : i32
    %c0_i32_0 = arith.constant 0 : i32
    %c0_i32_1 = arith.constant 0 : i32
    return %c0_i32, %c0_i32_0 : i32, i32
  }
  func.func @transform_9(%arg0: i32) -> (i32, i32) {
    %c0_i32 = arith.constant 0 : i32
    %c0_i32_0 = arith.constant 0 : i32
    %c0_i32_1 = arith.constant 0 : i32
    return %c0_i32, %c0_i32_0 : i32, i32
  }
  func.func @transform_10(%arg0: i32) -> (i32, i32) {
    %c0_i32 = arith.constant 0 : i32
    %c0_i32_0 = arith.constant 0 : i32
    %c0_i32_1 = arith.constant 0 : i32
    return %c0_i32, %c0_i32_0 : i32, i32
  }
  func.func @transform_11(%arg0: i32) -> (i32, i32) {
    %c0_i32 = arith.constant 0 : i32
    %c0_i32_0 = arith.constant 0 : i32
    return %arg0, %c0_i32 : i32, i32
  }
}

</mosaic_0001>

<bundles_post_ra>
// kernel: tpu_custom_call.1
= control target key start
LH: loop header
LB: loop body
LE: loop exit
PB: predicated region body
PF: predicated region fallthrough
CT: control target
= control target key end

     0   :  { %v3550_v1 = vmov 0.0   ;;  %vm3551_vm0 = vmmov 0   ;;  %v3552_v6 = vmov 0.0|0.0   ;;  %vm58_vm1 = vcmask 261120   ;;  %s4578_s0 = inlined_call_operand.vmem [shape: f32[8,32], index: 0, kind: input, shape index: {}]   ;;  %s4579_s1 = inlined_call_operand.vmem [shape: bf16[32,112], index: 1, kind: input, shape index: {}]   ;;  %s4580_s2 = inlined_call_operand.vmem [shape: f32[112,8], index: 2, kind: input, shape index: {}]   ;;  %s4581_s3 = inlined_call_operand.vmem [shape: bf16[8,112], index: 3, kind: input, shape index: {}]   ;;  %s4582_s4 = inlined_call_operand.vmem [shape: bf16[112,384], index: 4, kind: input, shape index: {}]   ;;  %s4583_s5 = inlined_call_operand.vmem [shape: f32[384,32], index: 5, kind: input, shape index: {}]   ;;  %s4584_s6 = inlined_call_operand.vmem [shape: bf16[32,384], index: 6, kind: input, shape index: {}]   ;;  %s4585_s7 = inlined_call_operand.vmem [shape: bf16[384,320], index: 7, kind: input, shape index: {}]   ;;  %s4586_s8 = inlined_call_operand.vmem [shape: f32[320,32], index: 8, kind: input, shape index: {}]   ;;  %s4587_s9 = inlined_call_operand.vmem [shape: bf16[32,320], index: 9, kind: input, shape index: {}]   ;;  %s4588_s10 = inlined_call_operand.vmem [shape: f32[2,72], index: 10, kind: input, shape index: {}]   ;;  %s4589_s11 = inlined_call_operand.hbm [shape: f32[8,256], index: 11, kind: output, shape index: {}]  }
   0x1   :  { %v3376_v0 = vld [vmem:[%s4579_s1] sm:$0xff]   ;;  %2859 = vmatprep.subr.bf16.mxu0 %v3550_v1  ;;  %v3377_v2 = vld [vmem:[%s4579_s1 + $0x8] sm:$0xff]   ;;  %2863 = vmatprep.mubr.msk.bf16.mxu0 %vm3551_vm0, %v3550_v1  ;;  %v106_v8 = vld [vmem:[%s4580_s2 + $0x10] sm:$0xff] }
   0x2   :  { %2860 = vmatpush3.bf16.msra.mxu0 %v3376_v0  ;;  %v40_v3 = vld [vmem:[%s4578_s0] sm:$0xff]  ;;  %v105_v5 = vld [vmem:[%s4580_s2 + $0x8] sm:$0xff]  ;;  %3119 = vmatprep.subr.bf16.mxu1 %v3552_v6  ;;  %v107_v9 = vld [vmem:[%s4580_s2 + $0x18] sm:$0xff] }
   0x3   :  { %v104_v4 = vld [vmem:[%s4580_s2] sm:$0xff]  ;;  %2861 = vmatprep.subr.bf16.mxu0 %v3550_v1  ;;  %2895 = vmatprep.mubr.msk.f32.mxu1 %vm3551_vm0, %v3550_v1  ;;  %v41_v10 = vpack.c.bf16 %v40_v3, %v40_v3  ;;  %v3123_v11 = vpack.c.bf16 %v107_v9, %v106_v8  ;;  %v109_v13 = vld [vmem:[%s4580_s2 + $0x28] sm:$0xff]  ;;  %v110_v14 = vld [vmem:[%s4580_s2 + $0x30] sm:$0xff] }
   0x4   :  { %v3120_v7 = vpack.c.bf16 %v105_v5, %v104_v4  ;;  %v108_v12 = vld [vmem:[%s4580_s2 + $0x20] sm:$0xff]  ;;  %v111_v15 = vld [vmem:[%s4580_s2 + $0x38] sm:$0xff]  ;;  %v113_v18 = vld [vmem:[%s4580_s2 + $0x48] sm:$0xff] }
   0x5   :  { %v3126_v16 = vpack.c.bf16 %v109_v13, %v108_v12  ;;  %v112_v17 = vld [vmem:[%s4580_s2 + $0x40] sm:$0xff]  ;;  %v3129_v19 = vpack.c.bf16 %v111_v15, %v110_v14  ;;  %v114_v20 = vld [vmem:[%s4580_s2 + $0x50] sm:$0xff]  ;;  %v115_v21 = vld [vmem:[%s4580_s2 + $0x58] sm:$0xff] }
   0x6   :  { %3121 = vmatpush3.bf16.msra.mxu1 %v3120_v7  ;;  %2862 = vmatpush3.bf16.msra.mxu0 %v3377_v2  ;;  %v3132_v22 = vpack.c.bf16 %v113_v18, %v112_v17  ;;  %v116_v23 = vld [vmem:[%s4580_s2 + $0x60] sm:$0xff]  ;;  %v117_v24 = vld [vmem:[%s4580_s2 + $0x68] sm:$0xff]  ;;  %v3135_v25 = vpack.c.bf16 %v115_v21, %v114_v20 }
   0x7   :  { %3122 = vmatprep.subr.bf16.mxu1 %v3552_v6  ;;  %3140 = vmatprep.subr.bf16.mxu0 %v3552_v6  ;;  %v3138_v26 = vpack.c.bf16 %v117_v24, %v116_v23 }
   0x9   :  { %2864 = vmatmul.mubr.msk.bf16.vlgmr.msra.gmra.mrb[0].mxu0 %vm58_vm1, %v41_v10 }
   0xa   :  { %3124 = vmatpush3.bf16.msra.mxu1 %v3123_v11  ;;  %3142 = vmatpush3.bf16.msra.mxu0 %v3120_v7 }
   0xb   :  { %3125 = vmatprep.subr.bf16.mxu1 %v3552_v6  ;;  %3143 = vmatprep.subr.bf16.mxu0 %v3552_v6 }
   0xc   :  { %2926 = vmatprep.mubr.msk.f32.mxu0 %vm3551_vm0, %v3550_v1 }
   0xe   :  { %3127 = vmatpush3.bf16.msra.mxu1 %v3126_v16  ;;  %3145 = vmatpush3.bf16.msra.mxu0 %v3123_v11 }
   0xf   :  { %3128 = vmatprep.subr.bf16.mxu1 %v3552_v6  ;;  %3146 = vmatprep.subr.bf16.mxu0 %v3552_v6 }
  0x12   :  { %3130 = vmatpush3.bf16.msra.mxu1 %v3129_v19  ;;  %3148 = vmatpush3.bf16.msra.mxu0 %v3126_v16 }
  0x13   :  { %3131 = vmatprep.subr.bf16.mxu1 %v3552_v6  ;;  %3149 = vmatprep.subr.bf16.mxu0 %v3552_v6 }
  0x16   :  { %3133 = vmatpush3.bf16.msra.mxu1 %v3132_v22  ;;  %3151 = vmatpush3.bf16.msra.mxu0 %v3129_v19 }
  0x17   :  { %3134 = vmatprep.subr.bf16.mxu1 %v3552_v6  ;;  %3152 = vmatprep.subr.bf16.mxu0 %v3552_v6 }
  0x1a   :  { %3136 = vmatpush3.bf16.msra.mxu1 %v3135_v25  ;;  %3154 = vmatpush3.bf16.msra.mxu0 %v3132_v22 }
  0x1b   :  { %3137 = vmatprep.subr.bf16.mxu1 %v3552_v6  ;;  %3155 = vmatprep.subr.bf16.mxu0 %v3552_v6 }
  0x1e   :  { %3139 = vmatpush3.bf16.msra.mxu1 %v3138_v26  ;;  %3157 = vmatpush3.bf16.msra.mxu0 %v3135_v25 }
  0x1f   :  { %2929 = vmatprep.subr.bf16.mxu1 %v3550_v1  ;;  %3158 = vmatprep.subr.bf16.mxu0 %v3552_v6 }
  0x22   :  { %3160 = vmatpush3.bf16.msra.mxu0 %v3138_v26 }
  0x23   :  { %2935 = vmatprep.subr.bf16.mxu0 %v3550_v1 }
  0x24   :  { %16 = vsyncpa [#allocation3], 0  ;;  %vm118_vm2 = vcmask 916480   ;;  %v282_v32 = vld [vmem:[%s4581_s3] sm:$0xf]  ;;  %vm288_vm3 = vcmask 1043456  }
  0x25   :  { %v290_v33 = vsel %vm288_vm3, %v282_v32, 0  ;;  %v3380_v34 = vld [vmem:[%s4582_s4 + $0x4] ss:$12 sps:$4 sm:$0xff]   ;;  %v3718_v43 = vld [vmem:[%s4588_s10] ss:$0 sm:$0xff]  ;;  %vm284_vm4 = vcmask 64512  }
  0x26   :  { %v3724_v46 = vld [vmem:[%s4588_s10 + $0x1] ss:$0 sm:$0xff]  ;;  %v3384_v50 = vld [vmem:[%s4582_s4 + $0x1c] ss:$12 sps:$4 sm:$0xff]   ;;  %v3382_v53 = vld [vmem:[%s4582_s4 + $0x18] ss:$12 sps:$4 sm:$0xff]  }
  0x27   :  { %v3378_v47 = vld [vmem:[%s4582_s4] ss:$12 sps:$4 sm:$0xff]   ;;  %v3381_v52 = vld [vmem:[%s4582_s4 + $0x8] ss:$12 sps:$4 sm:$0xff]   ;;  %v3386_v57 = vld [vmem:[%s4582_s4 + $0x30] ss:$12 sps:$4 sm:$0xff]  }
  0x28   :  { %v3388_v55 = vld [vmem:[%s4582_s4 + $0x34] ss:$12 sps:$4 sm:$0xff]   ;;  %v3392_v58 = vld [vmem:[%s4582_s4 + $0x4c] ss:$12 sps:$4 sm:$0xff]   ;;  %v3393_v61 = vld [vmem:[%s4582_s4 + $0x50] ss:$12 sps:$4 sm:$0xff]  }
  0x29   :  { %v3385_v56 = vld [vmem:[%s4582_s4 + $0x20] ss:$12 sps:$4 sm:$0xff]   ;;  %v3389_v59 = vld [vmem:[%s4582_s4 + $0x38] ss:$12 sps:$4 sm:$0xff]   ;;  %v3390_v60 = vld [vmem:[%s4582_s4 + $0x48] ss:$12 sps:$4 sm:$0xff]  }
  0x2a   :  { %v3396_v62 = vld [vmem:[%s4582_s4 + $0x64] ss:$12 sps:$4 sm:$0xff]   ;;  %v3394_v63 = vld [vmem:[%s4582_s4 + $0x60] ss:$12 sps:$4 sm:$0xff]   ;;  %v3397_v0 = vld [vmem:[%s4582_s4 + $0x68] ss:$12 sps:$4 sm:$0xff]  }
  0x2b   :  { %v3400_v2 = vld [vmem:[%s4582_s4 + $0x7c] ss:$12 sps:$4 sm:$0xff]   ;;  %v3398_v3 = vld [vmem:[%s4582_s4 + $0x78] ss:$12 sps:$4 sm:$0xff]   ;;  %v3401_v4 = vld [vmem:[%s4582_s4 + $0x80] ss:$12 sps:$4 sm:$0xff]  }
  0x2c   :  { %v3404_v5 = vld [vmem:[%s4582_s4 + $0x94] ss:$12 sps:$4 sm:$0xff]   ;;  %v3402_v7 = vld [vmem:[%s4582_s4 + $0x90] ss:$12 sps:$4 sm:$0xff]   ;;  %v3405_v8 = vld [vmem:[%s4582_s4 + $0x98] ss:$12 sps:$4 sm:$0xff]  }
  0x2d   :  { %v3553_v9 = vmov 0   ;;  %v621_v10 = vld [vmem:[%s4583_s5 + $0x80] sm:$0xff]  ;;  %v622_v11 = vld [vmem:[%s4583_s5 + $0x88] sm:$0xff]  ;;  %s3555_s14 = smov 120   ;;  %vm1869_vm5 = vcmask 523264   ;;  %s3556_s4 = smov 40  }
  0x2e   :  { %v3803_v12 = vpack.c.bf16 %v622_v11, %v621_v10  ;;  %v637_v22 = vld [vmem:[%s4583_s5 + $0x100] sm:$0xff]  ;;  %v638_v25 = vld [vmem:[%s4583_s5 + $0x108] sm:$0xff]  ;;  %v647_v11 = vld [vmem:[%s4583_s5 + $0x150] sm:$0xff]  ;;  %s3559_s22 = smov 96   ;;  %vm2416_vm6 = vcmask 785408   ;;  %s3560_s23 = smov [#allocation2]  }
  0x2f   :  { %v605_v26 = vld [vmem:[%s4583_s5] sm:$0xff]  ;;  %s2445_s24 = sshll.u32 %s3560_s23, 4  ;;  %s2446_s24 = int_to_ptr.vmem [resolvable:$true] %s2445_s24 }
  0x30   :  { %s3526_s25 = scalar_lea.vmem %s2446_s24, 256  ;;  %p3531_p1 = scmp.lt.s32.totalorder %s2446_s24, %s2446_s24 }
  0x31   :  { %p3527_p0 = scmp.ne.s32.totalorder %s2446_s24, %s3526_s25  ;;  %p3532_p2 = scmp.lt.s32.totalorder %s3526_s25, %s3526_s25 }
  0x33   :  { %p3533_p3 = por %p3532_p2, %p3531_p1 }
  0x35   :  { %p3534_p4 = pnand %p3533_p3, %p3527_p0 }
  0xdc   :  { %v3697_v27 = vpop.f32.mrb[0].mxu0 }
  0xdd   :  { %v192_v28 = vmul.f32 %v3697_v27, %v3697_v27  ;;  %v2865_v29 = vpop.f32.mrb[1].mxu0  ;;  %2896 = vmatmul.mubr.msk.f32.vlgmr.msra.gmra.mrb[0].mxu1 %vm118_vm2, %v3697_v27 }
  0xde   :  { %v99_v30 = vpop.f32.mrb[2].mxu0  ;;  %2931 = vmatprep.mubr.msk.bf16.mxu1 %vm3551_vm0, %v3550_v1  ;;  %2930 = vmatpush3.bf16.msra.mxu1 %v290_v33  ;;  %v624_v29 = vld [vmem:[%s4583_s5 + $0x98] sm:$0xff] }
  0xdf   :  { %v2866_v31 = vpop.f32.mrb[3].mxu0  ;;  %2927 = vmatmul.mubr.msk.f32.vlgmr.msra.gmra.mrb[4].mxu0 %vm118_vm2, %v192_v28  ;;  %524 = vmatprep.subr.bf16.mxu1 %v3380_v34  ;;  %v623_v28 = vld [vmem:[%s4583_s5 + $0x90] sm:$0xff] }
  0xe0   :  { %2937 = vmatprep.mubr.msk.bf16.mxu0 %vm3551_vm0, %v3550_v1  ;;  %2936 = vmatpush3.bf16.msra.mxu0 %v290_v33  ;;  %v3825_v31 = vpack.c.bf16 %v638_v25, %v637_v22  ;;  %v639_v33 = vld [vmem:[%s4583_s5 + $0x110] sm:$0xff]  ;;  %v650_v22 = vld [vmem:[%s4583_s5 + $0x168] sm:$0xff] }
  0xe1   :  { %2941 = vmatprep.subr.bf16.mxu0 %v3550_v1  ;;  %v618_v25 = vld [vmem:[%s4583_s5 + $0x68] sm:$0xff] }
 0x1b0   :  { %v188_v35 = vpop.f32.mrb[0].mxu1 }
 0x1b1   :  { %v266_v36 = vmul.f32 %v188_v35, %v188_v35  ;;  %v2897_v37 = vpop.f32.mrb[1].mxu1 }
 0x1b2   :  { %v262_v38 = vpop.f32.mrb[4].mxu0  ;;  %v607_v37 = vld [vmem:[%s4583_s5 + $0x10] sm:$0xff] }
 0x1b3   :  { %v267_v39 = vsub.f32 %v262_v38, %v266_v36  ;;  %v2928_v40 = vpop.f32.mrb[5].mxu0  ;;  %v3835_v36 = vpack.c.bf16 %v624_v29, %v623_v28  ;;  %v608_v38 = vld [vmem:[%s4583_s5 + $0x18] sm:$0xff] }
 0x1b4   :  { %v626_v40 = vld [vmem:[%s4583_s5 + $0xa8] sm:$0xff] }
 0x1b5   :  { %v268_v41 = vmax.f32 %v267_v39, 0.0  ;;  %v625_v39 = vld [vmem:[%s4583_s5 + $0xa0] sm:$0xff] }
 0x1b7   :  { %v269_v42 = vadd.f32 1e-05, %v268_v41 }
 0x1b9   :  { %3518 = vrsqrt.f32 %v269_v42  ;;  %v3855_v42 = vpack.c.bf16 %v608_v38, %v607_v37  ;;  %v620_v37 = vld [vmem:[%s4583_s5 + $0x78] sm:$0xff] }
 0x1c3   :  { %v3519_v44 = vpop.eup %3518 }
 0x1c4   :  { %v275_v45 = vmul.f32 %v3519_v44, %v3718_v43  ;;  %v641_v44 = vld [vmem:[%s4583_s5 + $0x120] sm:$0xff] }
 0x1c6   :  { %v283_v48 = vpack.c.bf16 %v275_v45, %v275_v45  ;;  %v276_v49 = vmul.f32 %v275_v45, %v188_v35  ;;  %v640_v35 = vld [vmem:[%s4583_s5 + $0x118] sm:$0xff]  ;;  %v642_v45 = vld [vmem:[%s4583_s5 + $0x128] sm:$0xff] }
 0x1c7   :  { %v3853_v41 = vpack.c.bf16 %v640_v35, %v639_v33  ;;  %v652_v33 = vld [vmem:[%s4583_s5 + $0x178] sm:$0xff]  ;;  %v619_v35 = vld [vmem:[%s4583_s5 + $0x70] sm:$0xff] }
 0x1c8   :  { %2932 = vmatmul.mubr.msk.bf16.vlgmr.msra.gmra.mrb[4].mxu1 %vm284_vm4, %v283_v48  ;;  %v281_v51 = vsub.f32 %v3724_v46, %v276_v49  ;;  %v609_v48 = vld [vmem:[%s4583_s5 + $0x20] sm:$0xff]  ;;  %v610_v49 = vld [vmem:[%s4583_s5 + $0x28] sm:$0xff] }
 0x1c9   :  { %525 = vmatpush1.bf16.msra.mxu1 %v3378_v47  ;;  %556 = vmatprep.mubr.bf16.mxu1 %v3553_v9  ;;  %v3865_v47 = vpack.c.bf16 %v626_v40, %v625_v39  ;;  %v3191_v39 = vpack.c.bf16 %v620_v37, %v619_v35  ;;  %v3456_v35 = vld [vmem:[%s4585_s7 + $0x110] ss:$12 sps:$4 sm:$0xff]   ;;  %v3423_v37 = vld [vmem:[%s4585_s7 + $0x48] ss:$12 sps:$4 sm:$0xff]  }
 0x1ca   :  { %v332_v54 = vpack.c.bf16 %v281_v51, %v281_v51  ;;  %526 = vmatprep.subr.bf16.mxu1 %v3384_v50  ;;  %v627_v50 = vld [vmem:[%s4583_s5 + $0xb0] sm:$0xff]  ;;  %v628_v51 = vld [vmem:[%s4583_s5 + $0xb8] sm:$0xff] }
 0x1cc   :  { %2938 = vmatmul.mubr.msk.bf16.vlgmr.msra.gmra.mrb[8].mxu0 %vm284_vm4, %v332_v54  ;;  %v643_v54 = vld [vmem:[%s4583_s5 + $0x130] sm:$0xff] }
 0x1cd   :  { %2942 = vmatpush3.bf16.msra.mxu0 %v3381_v52  ;;  %527 = vmatpush1.bf16.msra.mxu1 %v3382_v53  ;;  %v3883_v52 = vpack.c.bf16 %v642_v45, %v641_v44  ;;  %v3885_v53 = vpack.c.bf16 %v610_v49, %v609_v48 }
 0x1ce   :  { %2943 = vmatprep.subr.bf16.mxu0 %v3550_v1  ;;  %528 = vmatprep.subr.bf16.mxu1 %v3388_v55  ;;  %v644_v55 = vld [vmem:[%s4583_s5 + $0x138] sm:$0xff] }
 0x1cf   :  { %2955 = vmatprep.mubr.msk.bf16.mxu0 %vm3551_vm0, %v3550_v1 }
 0x1d1   :  { %2944 = vmatpush3.bf16.msra.mxu0 %v3385_v56  ;;  %529 = vmatpush1.bf16.msra.mxu1 %v3386_v57  ;;  %v3895_v56 = vpack.c.bf16 %v628_v51, %v627_v50  ;;  %v611_v57 = vld [vmem:[%s4583_s5 + $0x30] sm:$0xff] }
 0x1d2   :  { %2945 = vmatprep.subr.bf16.mxu0 %v3550_v1  ;;  %530 = vmatprep.subr.bf16.mxu1 %v3392_v58  ;;  %v612_v58 = vld [vmem:[%s4583_s5 + $0x38] sm:$0xff] }
 0x1d5   :  { %2946 = vmatpush3.bf16.msra.mxu0 %v3389_v59  ;;  %531 = vmatpush1.bf16.msra.mxu1 %v3390_v60  ;;  %v629_v59 = vld [vmem:[%s4583_s5 + $0xc0] sm:$0xff]  ;;  %v630_v60 = vld [vmem:[%s4583_s5 + $0xc8] sm:$0xff] }
 0x1d6   :  { %2947 = vmatprep.subr.bf16.mxu0 %v3550_v1  ;;  %532 = vmatprep.subr.bf16.mxu1 %v3396_v62  ;;  %v3913_v62 = vpack.c.bf16 %v612_v58, %v611_v57 }
 0x1d9   :  { %2948 = vmatpush3.bf16.msra.mxu0 %v3393_v61  ;;  %533 = vmatpush1.bf16.msra.mxu1 %v3394_v63  ;;  %v3911_v61 = vpack.c.bf16 %v644_v55, %v643_v54  ;;  %v645_v63 = vld [vmem:[%s4583_s5 + $0x140] sm:$0xff] }
 0x1da   :  { %2949 = vmatprep.subr.bf16.mxu0 %v3550_v1  ;;  %534 = vmatprep.subr.bf16.mxu1 %v3400_v2  ;;  %v3923_v2 = vpack.c.bf16 %v630_v60, %v629_v59 }
 0x1dd   :  { %2950 = vmatpush3.bf16.msra.mxu0 %v3397_v0  ;;  %535 = vmatpush1.bf16.msra.mxu1 %v3398_v3  ;;  %v646_v0 = vld [vmem:[%s4583_s5 + $0x148] sm:$0xff]  ;;  %v613_v3 = vld [vmem:[%s4583_s5 + $0x40] sm:$0xff] }
 0x1de   :  { %2951 = vmatprep.subr.bf16.mxu0 %v3550_v1  ;;  %536 = vmatprep.subr.bf16.mxu1 %v3404_v5  ;;  %v631_v5 = vld [vmem:[%s4583_s5 + $0xd0] sm:$0xff] }
 0x1e1   :  { %2952 = vmatpush3.bf16.msra.mxu0 %v3401_v4  ;;  %537 = vmatpush1.bf16.msra.mxu1 %v3402_v7  ;;  %v614_v4 = vld [vmem:[%s4583_s5 + $0x48] sm:$0xff]  ;;  %v632_v7 = vld [vmem:[%s4583_s5 + $0xd8] sm:$0xff] }
 0x1e2   :  { %2953 = vmatprep.subr.bf16.mxu0 %v3550_v1  ;;  %3162 = vmatprep.subr.bf16.mxu1 %v3803_v12  ;;  %v3941_v10 = vpack.c.bf16 %v614_v4, %v613_v3  ;;  %v3406_v3 = vld [vmem:[%s4584_s6] ss:$12 sps:$4 sm:$0xff]   ;;  %v3408_v4 = vld [vmem:[%s4584_s6 + $0x4] ss:$12 sps:$4 sm:$0xff]  }
 0x1e5   :  { %2954 = vmatpush3.bf16.msra.mxu0 %v3405_v8  ;;  %v3939_v8 = vpack.c.bf16 %v646_v0, %v645_v63 }
 0x1e6   :  { %3193 = vmatprep.subr.bf16.mxu0 %v3552_v6 }
 0x29b   :  { %v326_v13 = vpop.f32.mrb[4].mxu1 }
 0x29c   :  { %v376_v14 = vmul.f32 %v326_v13, %v3697_v27  ;;  %v2933_v15 = vpop.f32.mrb[5].mxu1  ;;  %v606_v27 = vld [vmem:[%s4583_s5 + $0x8] sm:$0xff]  ;;  %v648_v13 = vld [vmem:[%s4583_s5 + $0x158] sm:$0xff] }
 0x29d   :  { %v329_v16 = vpop.f32.mrb[6].mxu1  ;;  %v3827_v32 = vpack.c.bf16 %v606_v27, %v605_v26  ;;  %v615_v15 = vld [vmem:[%s4583_s5 + $0x50] sm:$0xff]  ;;  %v636_v27 = vld [vmem:[%s4583_s5 + $0xf8] sm:$0xff] }
 0x29e   :  { %v2934_v17 = vpop.f32.mrb[7].mxu1  ;;  %v616_v16 = vld [vmem:[%s4583_s5 + $0x58] sm:$0xff]  ;;  %v635_v26 = vld [vmem:[%s4583_s5 + $0xf0] sm:$0xff] }
 0x29f   :  { %v370_v18 = vpop.f32.mrb[8].mxu0  ;;  %v633_v17 = vld [vmem:[%s4583_s5 + $0xe0] sm:$0xff] }
 0x2a0   :  { %v377_v19 = vadd.f32 %v376_v14, %v370_v18  ;;  %v2939_v20 = vpop.f32.mrb[9].mxu0  ;;  %v3951_v14 = vpack.c.bf16 %v632_v7, %v631_v5  ;;  %v634_v18 = vld [vmem:[%s4583_s5 + $0xe8] sm:$0xff] }
 0x2a1   :  { %v373_v21 = vpop.f32.mrb[10].mxu0  ;;  %v3969_v20 = vpack.c.bf16 %v616_v16, %v615_v15  ;;  %v3409_v5 = vld [vmem:[%s4584_s6 + $0x8] ss:$12 sps:$4 sm:$0xff]  }
 0x2a2   :  { %v378_v23 = vmul.f32 0.1, %v377_v19  ;;  %v2940_v24 = vpop.f32.mrb[11].mxu0  ;;  %v649_v21 = vld [vmem:[%s4583_s5 + $0x160] sm:$0xff] }
 0x2a3   :  { %v617_v24 = vld [vmem:[%s4583_s5 + $0x60] sm:$0xff]  ;;  %v3212_v28 = vpack.c.bf16 %v650_v22, %v649_v21  ;;  %v3442_v22 = vld [vmem:[%s4585_s7 + $0x8] ss:$12 sps:$4 sm:$0xff]  }
 0x2a4   :  { %v379_v30 = vmax.f32 %v377_v19, %v378_v23  ;;  %v3967_v19 = vpack.c.bf16 %v648_v13, %v647_v11  ;;  %v3185_v23 = vpack.c.bf16 %v634_v18, %v633_v17  ;;  %v3187_v29 = vpack.c.bf16 %v618_v25, %v617_v24  ;;  %v3410_v11 = vld [vmem:[%s4584_s6 + $0x18] ss:$12 sps:$4 sm:$0xff]   ;;  %v3413_v13 = vld [vmem:[%s4584_s6 + $0x20] ss:$12 sps:$4 sm:$0xff]  }
 0x2a5   :  { %v3414_v21 = vld [vmem:[%s4585_s7] ss:$12 sps:$4 sm:$0xff]  }
 0x2a6   :  { %v380_v34 = vpack.c.bf16 %v379_v30, %v379_v30  ;;  %v651_v30 = vld [vmem:[%s4583_s5 + $0x170] sm:$0xff]  ;;  %s3554_s5 = smov 8   ;;  %v3446_v24 = vld [vmem:[%s4585_s7 + $0xe0] ss:$12 sps:$4 sm:$0xff]  }
 0x2a7   :  { %v3215_v38 = vpack.c.bf16 %v652_v33, %v651_v30  ;;  %v3420_v30 = vld [vmem:[%s4585_s7 + $0x30] ss:$12 sps:$4 sm:$0xff]   ;;  %v3452_v33 = vld [vmem:[%s4585_s7 + $0x38] ss:$12 sps:$4 sm:$0xff]  }
 0x2a8   :  { %2483 = vmatmul.mubr.msk.bf16.vlgmr.msra.gmra.mrb[8].mxu1 %vm118_vm2, %v380_v34  ;;  %2956 = vmatmul.mubr.msk.bf16.vlgmr.msra.gmra.mrb[12].mxu0 %vm118_vm2, %v380_v34  ;;  %v3189_v34 = vpack.c.bf16 %v636_v27, %v635_v26  ;;  %v3417_v26 = vld [vmem:[%s4585_s7 + $0x18] ss:$12 sps:$4 sm:$0xff]   ;;  %v3447_v27 = vld [vmem:[%s4585_s7 + $0x20] ss:$12 sps:$4 sm:$0xff]  }
 0x2a9   :  { %3195 = vmatpush3.bf16.msra.mxu0 %v3825_v31  ;;  %3164 = vmatpush3.bf16.msra.mxu1 %v3827_v32 }
 0x2aa   :  { %3196 = vmatprep.subr.bf16.mxu0 %v3552_v6  ;;  %3166 = vmatprep.subr.bf16.mxu1 %v3835_v36 }
 0x2ab   :  { %2991 = vmatprep.mubr.msk.f32.mxu0 %vm3551_vm0, %v3550_v1 }
 0x2ad   :  { %3198 = vmatpush3.bf16.msra.mxu0 %v3853_v41  ;;  %3168 = vmatpush3.bf16.msra.mxu1 %v3855_v42 }
 0x2ae   :  { %3199 = vmatprep.subr.bf16.mxu0 %v3552_v6  ;;  %3170 = vmatprep.subr.bf16.mxu1 %v3865_v47 }
 0x2b1   :  { %3201 = vmatpush3.bf16.msra.mxu0 %v3883_v52  ;;  %3172 = vmatpush3.bf16.msra.mxu1 %v3885_v53 }
 0x2b2   :  { %3202 = vmatprep.subr.bf16.mxu0 %v3552_v6  ;;  %3174 = vmatprep.subr.bf16.mxu1 %v3895_v56 }
 0x2b5   :  { %3204 = vmatpush3.bf16.msra.mxu0 %v3911_v61  ;;  %3176 = vmatpush3.bf16.msra.mxu1 %v3913_v62 }
 0x2b6   :  { %3205 = vmatprep.subr.bf16.mxu0 %v3552_v6  ;;  %3178 = vmatprep.subr.bf16.mxu1 %v3923_v2 }
 0x2b9   :  { %3207 = vmatpush3.bf16.msra.mxu0 %v3939_v8  ;;  %3180 = vmatpush3.bf16.msra.mxu1 %v3941_v10 }
 0x2ba   :  { %3208 = vmatprep.subr.bf16.mxu0 %v3552_v6  ;;  %3182 = vmatprep.subr.bf16.mxu1 %v3951_v14 }
 0x2bd   :  { %3210 = vmatpush3.bf16.msra.mxu0 %v3967_v19  ;;  %3184 = vmatpush3.bf16.msra.mxu1 %v3969_v20 }
 0x2be   :  { %3211 = vmatprep.subr.bf16.mxu0 %v3552_v6  ;;  %3186 = vmatprep.subr.bf16.mxu1 %v3185_v23 }
 0x2c1   :  { %3213 = vmatpush3.bf16.msra.mxu0 %v3212_v28  ;;  %3188 = vmatpush3.bf16.msra.mxu1 %v3187_v29 }
 0x2c2   :  { %3214 = vmatprep.subr.bf16.mxu0 %v3552_v6  ;;  %3190 = vmatprep.subr.bf16.mxu1 %v3189_v34 }
 0x2c5   :  { %3216 = vmatpush3.bf16.msra.mxu0 %v3215_v38  ;;  %3192 = vmatpush3.bf16.msra.mxu1 %v3191_v39 }
 0x2c6   :  { %3249 = vmatprep.subr.bf16.mxu0 %v3552_v6  ;;  %3218 = vmatprep.subr.bf16.mxu1 %v3803_v12 }
 0x37b   :  { %v4009_v40 = vpop.f32.mrb[8].mxu1  ;;  %v4011_v44 = vpop.f32.mrb[12].mxu0 }
 0x37c   :  { %v4013_v45 = vpop.f32.mrb[9].mxu1  ;;  %v2957_v48 = vpop.f32.mrb[13].mxu0  ;;  %2992 = vmatmul.mubr.f32.vlgmr.msra.gmra.mrb[6].mxu0 %v4011_v44 }
 0x37d   :  { %v794_v49 = vmul.f32 %v4013_v45, %v4013_v45  ;;  %3251 = vmatpush3.bf16.msra.mxu0 %v3825_v31  ;;  %v562_v50 = vpop.f32.mrb[10].mxu1  ;;  %v602_v51 = vpop.f32.mrb[14].mxu0  ;;  %717 = vmatprep.mubr.f32.mxu1 %v4013_v45  ;;  %v795_v31 = vmul.f32 %v4011_v44, %v4011_v44  ;;  %v3461_v48 = vld [vmem:[%s4585_s7 + $0x128] ss:$12 sps:$4 sm:$0xff]  }
 0x37e   :  { %v563_v54 = vpop.f32.mrb[11].mxu1  ;;  %v2958_v12 = vpop.f32.mrb[15].mxu0  ;;  %718 = vmatmul.mubr.f32.vlgmr.msra.gmra.mrb[2].mxu1 %v4009_v40  ;;  %3252 = vmatprep.subr.bf16.mxu0 %v3552_v6  ;;  %v3462_v50 = vld [vmem:[%s4585_s7 + $0x68] ss:$12 sps:$4 sm:$0xff]  }
 0x37f   :  { %3220 = vmatpush3.bf16.msra.mxu1 %v3827_v32  ;;  %860 = vmatprep.mubr.f32.mxu1 %v794_v49  ;;  %v793_v32 = vmul.f32 %v4009_v40, %v4009_v40  ;;  %v3426_v49 = vld [vmem:[%s4585_s7 + $0x60] ss:$12 sps:$4 sm:$0xff]   ;;  %v3431_v51 = vld [vmem:[%s4585_s7 + $0x7c] ss:$12 sps:$4 sm:$0xff]   ;;  %v3429_v12 = vld [vmem:[%s4585_s7 + $0x78] ss:$12 sps:$4 sm:$0xff]  }
 0x380   :  { %3222 = vmatprep.subr.bf16.mxu1 %v3835_v36  ;;  %3026 = vmatprep.mubr.msk.f32.mxu0 %vm3551_vm0, %v3550_v1  ;;  %v3466_v54 = vld [vmem:[%s4585_s7 + $0x140] ss:$12 sps:$4 sm:$0xff]  }
 0x381   :  { %3254 = vmatpush3.bf16.msra.mxu0 %v3853_v41 }
 0x382   :  { %3255 = vmatprep.subr.bf16.mxu0 %v3552_v6 }
 0x383   :  { %3224 = vmatpush3.bf16.msra.mxu1 %v3855_v42 }
 0x384   :  { %3226 = vmatprep.subr.bf16.mxu1 %v3865_v47 }
 0x385   :  { %3257 = vmatpush3.bf16.msra.mxu0 %v3883_v52 }
 0x386   :  { %3258 = vmatprep.subr.bf16.mxu0 %v3552_v6 }
 0x387   :  { %3228 = vmatpush3.bf16.msra.mxu1 %v3885_v53 }
 0x388   :  { %3230 = vmatprep.subr.bf16.mxu1 %v3895_v56 }
 0x389   :  { %3260 = vmatpush3.bf16.msra.mxu0 %v3911_v61 }
 0x38a   :  { %3261 = vmatprep.subr.bf16.mxu0 %v3552_v6 }
 0x38b   :  { %3232 = vmatpush3.bf16.msra.mxu1 %v3913_v62 }
 0x38c   :  { %3234 = vmatprep.subr.bf16.mxu1 %v3923_v2 }
 0x38d   :  { %3263 = vmatpush3.bf16.msra.mxu0 %v3939_v8 }
 0x38e   :  { %3264 = vmatprep.subr.bf16.mxu0 %v3552_v6 }
 0x38f   :  { %3236 = vmatpush3.bf16.msra.mxu1 %v3941_v10  ;;  %v3412_v10 = vld [vmem:[%s4584_s6 + $0x1c] ss:$12 sps:$4 sm:$0xff]   ;;  %s3557_s6 = smov 88  }
 0x390   :  { %3238 = vmatprep.subr.bf16.mxu1 %v3951_v14 }
 0x391   :  { %3266 = vmatpush3.bf16.msra.mxu0 %v3967_v19 }
 0x392   :  { %3267 = vmatprep.subr.bf16.mxu0 %v3552_v6 }
 0x393   :  { %3240 = vmatpush3.bf16.msra.mxu1 %v3969_v20  ;;  %v3441_v20 = vld [vmem:[%s4585_s7 + $0xc8] ss:$12 sps:$4 sm:$0xff]  }
 0x394   :  { %3242 = vmatprep.subr.bf16.mxu1 %v3185_v23  ;;  %v3419_v23 = vld [vmem:[%s4585_s7 + $0x1c] ss:$12 sps:$4 sm:$0xff]  }
 0x395   :  { %3269 = vmatpush3.bf16.msra.mxu0 %v3212_v28  ;;  %v3422_v28 = vld [vmem:[%s4585_s7 + $0x34] ss:$12 sps:$4 sm:$0xff]  }
 0x396   :  { %3270 = vmatprep.subr.bf16.mxu0 %v3552_v6 }
 0x397   :  { %3244 = vmatpush3.bf16.msra.mxu1 %v3187_v29  ;;  %v3451_v29 = vld [vmem:[%s4585_s7 + $0xf8] ss:$12 sps:$4 sm:$0xff]  }
 0x398   :  { %3246 = vmatprep.subr.bf16.mxu1 %v3189_v34  ;;  %v3425_v34 = vld [vmem:[%s4585_s7 + $0x4c] ss:$12 sps:$4 sm:$0xff]  }
 0x399   :  { %3272 = vmatpush3.bf16.msra.mxu0 %v3215_v38  ;;  %v3457_v38 = vld [vmem:[%s4585_s7 + $0x50] ss:$12 sps:$4 sm:$0xff]  }
 0x39a   :  { %3029 = vmatprep.subr.bf16.mxu0 %v3550_v1 }
 0x39b   :  { %3248 = vmatpush3.bf16.msra.mxu1 %v3191_v39  ;;  %v3428_v39 = vld [vmem:[%s4585_s7 + $0x64] ss:$12 sps:$4 sm:$0xff]  }
 0x39c   :  { %3027 = vmatmul.mubr.f32.vlgmr.msra.gmra.mrb[16].mxu0 %v795_v31  ;;  %1003 = vmatprep.subr.bf16.mxu1 %v3408_v4  ;;  %v3467_v31 = vld [vmem:[%s4585_s7 + $0x80] ss:$12 sps:$4 sm:$0xff]  }
 0x39d   :  { %3033 = vmatprep.mubr.msk.bf16.mxu0 %vm3551_vm0, %v3550_v1  ;;  %3030 = vmatpush3.bf16.msra.mxu0 %v3409_v5 }
 0x39e   :  { %861 = vmatmul.mubr.f32.vlgmr.msra.gmra.mrb[12].mxu1 %v793_v32  ;;  %3031 = vmatprep.subr.bf16.mxu0 %v3550_v1  ;;  %v3434_v32 = vld [vmem:[%s4585_s7 + $0x94] ss:$12 sps:$4 sm:$0xff]  }
 0x39f   :  { %1035 = vmatprep.mubr.bf16.mxu1 %v3553_v9  ;;  %1004 = vmatpush1.bf16.msra.mxu1 %v3406_v3 }
 0x3a0   :  { %1005 = vmatprep.subr.bf16.mxu1 %v3412_v10 }
 0x3a1   :  { %3032 = vmatpush3.bf16.msra.mxu0 %v3413_v13 }
 0x3a2   :  { %3037 = vmatprep.subr.bf16.mxu0 %v3550_v1 }
 0x3a3   :  { %1006 = vmatpush1.bf16.msra.mxu1 %v3410_v11 }
 0x3a4   :  { %1091 = vmatprep.subr.bf16.mxu1 %v3408_v4  ;;  %v3472_v4 = vld [vmem:[%s4585_s7 + $0x98] ss:$12 sps:$4 sm:$0xff]  }
 0x44f   :  { %v789_v36 = vpop.f32.mrb[6].mxu0 }
 0x450   :  { %v2993_v41 = vpop.f32.mrb[7].mxu0 }
 0x451   :  { %v2656_v42 = vpop.f32.mrb[2].mxu1  ;;  %v3437_v41 = vld [vmem:[%s4585_s7 + $0xac] ss:$12 sps:$4 sm:$0xff]  }
 0x452   :  { %v2657_v47 = vpop.f32.mrb[3].mxu1 }
 0x453   :  { %v2658_v52 = vadd.f32 %v2657_v47, %v2656_v42  ;;  %v3435_v42 = vld [vmem:[%s4585_s7 + $0xa8] ss:$12 sps:$4 sm:$0xff]   ;;  %v3440_v47 = vld [vmem:[%s4585_s7 + $0xc4] ss:$12 sps:$4 sm:$0xff]  }
 0x455   :  { %v790_v53 = vadd.f32 %v2658_v52, %v789_v36  ;;  %v3432_v36 = vld [vmem:[%s4585_s7 + $0x90] ss:$12 sps:$4 sm:$0xff]   ;;  %v3438_v52 = vld [vmem:[%s4585_s7 + $0xc0] ss:$12 sps:$4 sm:$0xff]  }
 0x457   :  { %v936_v60 = vmul.f32 %v790_v53, %v790_v53 }
 0x46f   :  { %v932_v55 = vpop.f32.mrb[16].mxu0 }
 0x470   :  { %v3028_v56 = vpop.f32.mrb[17].mxu0 }
 0x471   :  { %v2708_v57 = vpop.f32.mrb[12].mxu1  ;;  %v3450_v56 = vld [vmem:[%s4585_s7 + $0xf4] ss:$12 sps:$4 sm:$0xff]  }
 0x472   :  { %v2709_v58 = vpop.f32.mrb[13].mxu1 }
 0x473   :  { %v2710_v59 = vadd.f32 %v2709_v58, %v2708_v57  ;;  %v3448_v57 = vld [vmem:[%s4585_s7 + $0xf0] ss:$12 sps:$4 sm:$0xff]   ;;  %v3455_v58 = vld [vmem:[%s4585_s7 + $0x10c] ss:$12 sps:$4 sm:$0xff]  }
 0x475   :  { %v933_v61 = vadd.f32 %v2710_v59, %v932_v55  ;;  %v3443_v55 = vld [vmem:[%s4585_s7 + $0xd8] ss:$12 sps:$4 sm:$0xff]   ;;  %v3453_v59 = vld [vmem:[%s4585_s7 + $0x108] ss:$12 sps:$4 sm:$0xff]  }
 0x477   :  { %v937_v62 = vsub.f32 %v933_v61, %v936_v60  ;;  %v3460_v60 = vld [vmem:[%s4585_s7 + $0x124] ss:$12 sps:$4 sm:$0xff]   ;;  %v3458_v61 = vld [vmem:[%s4585_s7 + $0x120] ss:$12 sps:$4 sm:$0xff]  }
 0x479   :  { %v938_v63 = vmax.f32 %v937_v62, 0.0  ;;  %v3465_v62 = vld [vmem:[%s4585_s7 + $0x13c] ss:$12 sps:$4 sm:$0xff]  }
 0x47b   :  { %v939_v0 = vadd.f32 1e-05, %v938_v63  ;;  %v3463_v63 = vld [vmem:[%s4585_s7 + $0x138] ss:$12 sps:$4 sm:$0xff]  }
 0x47d   :  { %3520 = vrsqrt.f32 %v939_v0  ;;  %v3470_v0 = vld [vmem:[%s4585_s7 + $0x154] ss:$12 sps:$4 sm:$0xff]  }
 0x487   :  { %v3521_v2 = vpop.eup %3520 }
 0x488   :  { %942 = vrot.lane.b32.xlu0 %v3521_v2, %s3554_s5  ;;  %v3471_v2 = vld [vmem:[%s4585_s7 + $0x158] ss:$12 sps:$4 sm:$0xff]  }
 0x4fa   :  { %v943_v7 = vpop.permute.xlu0 %942 }
 0x4fb   :  { %v945_v8 = vmul.f32 %v3718_v43, %v943_v7  ;;  %v3476_v7 = vld [vmem:[%s4585_s7 + $0x170] ss:$12 sps:$4 sm:$0xff]  }
 0x4fd   :  { %947 = vrot.lane.b32.xlu0 %v945_v8, %s3555_s14  ;;  %v964_v15 = vpack.c.bf16 %v945_v8, %v945_v8  ;;  %v3473_v8 = vld [vmem:[%s4585_s7 + $0x168] ss:$12 sps:$4 sm:$0xff]  }
 0x56f   :  { %v948_v43 = vpop.permute.xlu0 %947 }
 0x570   :  { %v950_v14 = vmul.f32 %v948_v43, %v790_v53  ;;  %v3445_v53 = vld [vmem:[%s4585_s7 + $0xdc] ss:$12 sps:$4 sm:$0xff]  }
 0x572   :  { %952 = vrot.lane.b32.xlu1 %v950_v14, %s3554_s5 }
 0x576   :  { %966 = vrot.lane.b32.xlu1 %v964_v15, %s3555_s14 }
 0x5e4   :  { %v953_v16 = vpop.permute.xlu1 %952 }
 0x5e5   :  { %v955_v17 = vsub.f32 %v3724_v46, %v953_v16  ;;  %v3416_v46 = vld [vmem:[%s4585_s7 + $0x4] ss:$12 sps:$4 sm:$0xff]  }
 0x5e7   :  { %v1084_v18 = vpack.c.bf16 %v955_v17, %v955_v17 }
 0x5e8   :  { %v967_v19 = vpop.permute.xlu1 %966 }
 0x5e9   :  { %1086 = vrot.lane.b32.xlu0 %v1084_v18, %s3555_s14  ;;  %2491 = vmatmul.mubr.msk.bf16.vlgmr.msra.gmra.mrb[16].mxu1 %vm58_vm1, %v967_v19 }
 0x5ea   :  { %3034 = vmatmul.mubr.msk.bf16.vlgmr.msra.gmra.mrb[20].mxu0 %vm58_vm1, %v967_v19  ;;  %1092 = vmatpush1.bf16.msra.mxu1 %v3406_v3  ;;  %v3468_v3 = vld [vmem:[%s4585_s7 + $0x150] ss:$12 sps:$4 sm:$0xff]  }
 0x5eb   :  { %3038 = vmatpush3.bf16.msra.mxu0 %v3409_v5  ;;  %1093 = vmatprep.subr.bf16.mxu1 %v3412_v10  ;;  %v3475_v5 = vld [vmem:[%s4585_s7 + $0x16c] ss:$12 sps:$4 sm:$0xff]   ;;  %v3477_v10 = vld [vmem:[%s4585_s7 + $0xb0] ss:$12 sps:$4 sm:$0xff]  }
 0x5ec   :  { %3039 = vmatprep.subr.bf16.mxu0 %v3550_v1  ;;  %1123 = vmatprep.mubr.bf16.mxu1 %v3553_v9 }
 0x5ed   :  { %3041 = vmatprep.mubr.msk.bf16.mxu0 %vm3551_vm0, %v3550_v1 }
 0x5ee   :  { %1094 = vmatpush1.bf16.msra.mxu1 %v3410_v11  ;;  %v3480_v11 = vld [vmem:[%s4585_s7 + $0x184] ss:$12 sps:$4 sm:$0xff]  }
 0x5ef   :  { %3040 = vmatpush3.bf16.msra.mxu0 %v3413_v13  ;;  %1667 = vmatprep.subr.bf16.mxu1 %v3416_v46 }
 0x5f0   :  { %2734 = vmatprep.subr.bf16.mxu0 %v3441_v20 }
 0x65b   :  { %v1087_v25 = vpop.permute.xlu0 %1086 }
 0x65c   :  { %2493 = vmatmul.mubr.msk.bf16.vlgmr.msra.gmra.mrb[20].mxu1 %vm58_vm1, %v1087_v25  ;;  %3042 = vmatmul.mubr.msk.bf16.vlgmr.msra.gmra.mrb[24].mxu0 %vm58_vm1, %v1087_v25 }
 0x65d   :  { %1668 = vmatpush1.bf16.msra.mxu1 %v3414_v21  ;;  %2735 = vmatpush3.bf16.msra.mxu0 %v3442_v22 }
 0x65e   :  { %1669 = vmatprep.subr.bf16.mxu1 %v3419_v23  ;;  %2736 = vmatprep.subr.bf16.mxu0 %v3446_v24 }
 0x661   :  { %1670 = vmatpush1.bf16.msra.mxu1 %v3417_v26  ;;  %2737 = vmatpush3.bf16.msra.mxu0 %v3447_v27 }
 0x662   :  { %1671 = vmatprep.subr.bf16.mxu1 %v3422_v28  ;;  %2738 = vmatprep.subr.bf16.mxu0 %v3451_v29 }
 0x665   :  { %1672 = vmatpush1.bf16.msra.mxu1 %v3420_v30  ;;  %2739 = vmatpush3.bf16.msra.mxu0 %v3452_v33 }
 0x666   :  { %1673 = vmatprep.subr.bf16.mxu1 %v3425_v34  ;;  %2740 = vmatprep.subr.bf16.mxu0 %v3456_v35 }
 0x669   :  { %1674 = vmatpush1.bf16.msra.mxu1 %v3423_v37  ;;  %2741 = vmatpush3.bf16.msra.mxu0 %v3457_v38  ;;  %v3478_v38 = vld [vmem:[%s4585_s7 + $0x180] ss:$12 sps:$4 sm:$0xff]  }
 0x66a   :  { %1675 = vmatprep.subr.bf16.mxu1 %v3428_v39  ;;  %2742 = vmatprep.subr.bf16.mxu0 %v3461_v48  ;;  %v3481_v39 = vld [vmem:[%s4585_s7 + $0x188] ss:$12 sps:$4 sm:$0xff]  }
 0x66d   :  { %1676 = vmatpush1.bf16.msra.mxu1 %v3426_v49  ;;  %2743 = vmatpush3.bf16.msra.mxu0 %v3462_v50  ;;  %v3484_v49 = vld [vmem:[%s4585_s7 + $0x19c] ss:$12 sps:$4 sm:$0xff]   ;;  %v3482_v50 = vld [vmem:[%s4585_s7 + $0x198] ss:$12 sps:$4 sm:$0xff]  }
 0x66e   :  { %1677 = vmatprep.subr.bf16.mxu1 %v3431_v51  ;;  %2744 = vmatprep.subr.bf16.mxu0 %v3466_v54  ;;  %v3485_v51 = vld [vmem:[%s4585_s7 + $0x1a0] ss:$12 sps:$4 sm:$0xff]  }
 0x66f   :  { %v3488_v54 = vld [vmem:[%s4585_s7 + $0x1b4] ss:$12 sps:$4 sm:$0xff]  }
 0x671   :  { %1678 = vmatpush1.bf16.msra.mxu1 %v3429_v12  ;;  %2745 = vmatpush3.bf16.msra.mxu0 %v3467_v31  ;;  %v3486_v12 = vld [vmem:[%s4585_s7 + $0x1b0] ss:$12 sps:$4 sm:$0xff]   ;;  %v3489_v31 = vld [vmem:[%s4585_s7 + $0x1b8] ss:$12 sps:$4 sm:$0xff]  }
 0x672   :  { %1679 = vmatprep.subr.bf16.mxu1 %v3434_v32  ;;  %2746 = vmatprep.subr.bf16.mxu0 %v3471_v2  ;;  %v3492_v32 = vld [vmem:[%s4585_s7 + $0x1cc] ss:$12 sps:$4 sm:$0xff]  }
 0x675   :  { %1680 = vmatpush1.bf16.msra.mxu1 %v3432_v36  ;;  %2747 = vmatpush3.bf16.msra.mxu0 %v3472_v4  ;;  %v3490_v36 = vld [vmem:[%s4585_s7 + $0x1c8] ss:$12 sps:$4 sm:$0xff]  }
 0x676   :  { %1681 = vmatprep.subr.bf16.mxu1 %v3437_v41  ;;  %2748 = vmatprep.subr.bf16.mxu0 %v3476_v7  ;;  %v3493_v41 = vld [vmem:[%s4585_s7 + $0x1d0] ss:$12 sps:$4 sm:$0xff]   ;;  %v1846_v4 = vld [vmem:[%s4586_s8 + $0x88] sm:$0xff]  ;;  %v1829_v7 = vld [vmem:[%s4586_s8] sm:$0xff] }
 0x679   :  { %1682 = vmatpush1.bf16.msra.mxu1 %v3435_v42  ;;  %2749 = vmatpush3.bf16.msra.mxu0 %v3477_v10  ;;  %v3496_v42 = vld [vmem:[%s4585_s7 + $0x1e4] ss:$12 sps:$4 sm:$0xff]  }
 0x67a   :  { %1683 = vmatprep.subr.bf16.mxu1 %v3440_v47  ;;  %3045 = vmatprep.subr.bf16.mxu0 %v3550_v1  ;;  %v3494_v47 = vld [vmem:[%s4585_s7 + $0x1e0] ss:$12 sps:$4 sm:$0xff]  }
 0x67d   :  { %1684 = vmatpush1.bf16.msra.mxu1 %v3438_v52  ;;  %v3497_v52 = vld [vmem:[%s4585_s7 + $0x1e8] ss:$12 sps:$4 sm:$0xff]  }
 0x67e   :  { %1685 = vmatprep.subr.bf16.mxu1 %v3445_v53  ;;  %v3500_v53 = vld [vmem:[%s4585_s7 + $0x1fc] ss:$12 sps:$4 sm:$0xff]  }
 0x681   :  { %1686 = vmatpush1.bf16.msra.mxu1 %v3443_v55  ;;  %v3498_v55 = vld [vmem:[%s4585_s7 + $0x1f8] ss:$12 sps:$4 sm:$0xff]  }
 0x682   :  { %1687 = vmatprep.subr.bf16.mxu1 %v3450_v56  ;;  %v3501_v56 = vld [vmem:[%s4585_s7 + $0x200] ss:$12 sps:$4 sm:$0xff]  }
 0x685   :  { %1688 = vmatpush1.bf16.msra.mxu1 %v3448_v57  ;;  %v3504_v57 = vld [vmem:[%s4585_s7 + $0x214] ss:$12 sps:$4 sm:$0xff]  }
 0x686   :  { %1689 = vmatprep.subr.bf16.mxu1 %v3455_v58  ;;  %v3502_v58 = vld [vmem:[%s4585_s7 + $0x210] ss:$12 sps:$4 sm:$0xff]  }
 0x689   :  { %1690 = vmatpush1.bf16.msra.mxu1 %v3453_v59  ;;  %v3505_v59 = vld [vmem:[%s4585_s7 + $0x218] ss:$12 sps:$4 sm:$0xff]  }
 0x68a   :  { %1691 = vmatprep.subr.bf16.mxu1 %v3460_v60 }
 0x68d   :  { %1692 = vmatpush1.bf16.msra.mxu1 %v3458_v61  ;;  %v3508_v61 = vld [vmem:[%s4585_s7 + $0x22c] ss:$12 sps:$4 sm:$0xff]  }
 0x68e   :  { %1693 = vmatprep.subr.bf16.mxu1 %v3465_v62  ;;  %v3506_v62 = vld [vmem:[%s4585_s7 + $0x228] ss:$12 sps:$4 sm:$0xff]  }
 0x691   :  { %1694 = vmatpush1.bf16.msra.mxu1 %v3463_v63  ;;  %v3509_v63 = vld [vmem:[%s4585_s7 + $0x230] ss:$12 sps:$4 sm:$0xff]  }
 0x692   :  { %1695 = vmatprep.subr.bf16.mxu1 %v3470_v0 }
 0x695   :  { %1696 = vmatpush1.bf16.msra.mxu1 %v3468_v3  ;;  %v1845_v3 = vld [vmem:[%s4586_s8 + $0x80] sm:$0xff] }
 0x696   :  { %1697 = vmatprep.subr.bf16.mxu1 %v3475_v5  ;;  %v4327_v5 = vpack.c.bf16 %v1846_v4, %v1845_v3 }
 0x699   :  { %1698 = vmatpush1.bf16.msra.mxu1 %v3473_v8  ;;  %v1830_v8 = vld [vmem:[%s4586_s8 + $0x8] sm:$0xff] }
 0x69a   :  { %1708 = vmatprep.subr.bf16.mxu1 %v3480_v11  ;;  %v4335_v10 = vpack.c.bf16 %v1830_v8, %v1829_v7  ;;  %v1847_v11 = vld [vmem:[%s4586_s8 + $0x90] sm:$0xff] }
 0x6bc   :  { %v1037_v13 = vpop.f32.mrb[16].mxu1 }
 0x6bd   :  { %v1172_v43 = vmul.f32 %v1037_v13, %v4009_v40  ;;  %v1078_v14 = vpop.f32.mrb[20].mxu0  ;;  %v1039_v15 = vpop.f32.mrb[17].mxu1  ;;  %v1848_v13 = vld [vmem:[%s4586_s8 + $0x98] sm:$0xff] }
 0x6be   :  { %v1174_v16 = vmul.f32 %v1078_v14, %v4011_v44  ;;  %v1173_v17 = vmul.f32 %v1039_v15, %v4013_v45  ;;  %v3035_v18 = vpop.f32.mrb[21].mxu0  ;;  %v1041_v19 = vpop.f32.mrb[18].mxu1  ;;  %v4348_v14 = vpack.c.bf16 %v1848_v13, %v1847_v11  ;;  %v1832_v15 = vld [vmem:[%s4586_s8 + $0x18] sm:$0xff] }
 0x6bf   :  { %v1081_v46 = vpop.f32.mrb[22].mxu0  ;;  %v1042_v20 = vpop.f32.mrb[19].mxu1 }
 0x6c0   :  { %v3036_v21 = vpop.f32.mrb[23].mxu0  ;;  %v1833_v46 = vld [vmem:[%s4586_s8 + $0x20] sm:$0xff]  ;;  %v1834_v20 = vld [vmem:[%s4586_s8 + $0x28] sm:$0xff] }
 0x6c1   :  { %v1851_v21 = vld [vmem:[%s4586_s8 + $0xb0] sm:$0xff] }
 0x72f   :  { %v1125_v22 = vpop.f32.mrb[20].mxu1  ;;  %v1166_v23 = vpop.f32.mrb[24].mxu0 }
 0x730   :  { %v1175_v24 = vadd.f32 %v1172_v43, %v1125_v22  ;;  %v4235_v25 = vadd.f32 %v1174_v16, %v1166_v23  ;;  %v1127_v26 = vpop.f32.mrb[21].mxu1  ;;  %v3043_v27 = vpop.f32.mrb[25].mxu0  ;;  %v1831_v43 = vld [vmem:[%s4586_s8 + $0x10] sm:$0xff]  ;;  %v1849_v16 = vld [vmem:[%s4586_s8 + $0xa0] sm:$0xff]  ;;  %v1852_v22 = vld [vmem:[%s4586_s8 + $0xb8] sm:$0xff]  ;;  %v4377_v23 = vpack.c.bf16 %v1834_v20, %v1833_v46 }
 0x731   :  { %v1176_v28 = vadd.f32 %v1173_v17, %v1127_v26  ;;  %v1129_v40 = vpop.f32.mrb[22].mxu1  ;;  %v1169_v29 = vpop.f32.mrb[26].mxu0  ;;  %v1850_v17 = vld [vmem:[%s4586_s8 + $0xa8] sm:$0xff]  ;;  %v4359_v18 = vpack.c.bf16 %v1832_v15, %v1831_v43  ;;  %v1836_v26 = vld [vmem:[%s4586_s8 + $0x38] sm:$0xff]  ;;  %v1861_v27 = vld [vmem:[%s4586_s8 + $0x100] sm:$0xff] }
 0x732   :  { %v1178_v30 = vmul.f32 0.1, %v1175_v24  ;;  %v1130_v33 = vpop.f32.mrb[23].mxu1  ;;  %v3044_v44 = vpop.f32.mrb[27].mxu0  ;;  %v1180_v60 = vmul.f32 0.1, %v4235_v25  ;;  %v4361_v19 = vpack.c.bf16 %v1850_v17, %v1849_v16 }
 0x733   :  { %v1179_v34 = vmul.f32 0.1, %v1176_v28  ;;  %v1853_v40 = vld [vmem:[%s4586_s8 + $0xc0] sm:$0xff]  ;;  %v1854_v29 = vld [vmem:[%s4586_s8 + $0xc8] sm:$0xff]  ;;  %v1863_v33 = vld [vmem:[%s4586_s8 + $0x110] sm:$0xff] }
 0x734   :  { %v1181_v45 = vmax.f32 %v1175_v24, %v1178_v30  ;;  %v1183_v0 = vmax.f32 %v4235_v25, %v1180_v60  ;;  %v1835_v24 = vld [vmem:[%s4586_s8 + $0x30] sm:$0xff]  ;;  %v4383_v25 = vpack.c.bf16 %v1852_v22, %v1851_v21  ;;  %v1864_v44 = vld [vmem:[%s4586_s8 + $0x118] sm:$0xff] }
 0x735   :  { %v1182_v35 = vmax.f32 %v1176_v28, %v1179_v34  ;;  %v1862_v28 = vld [vmem:[%s4586_s8 + $0x108] sm:$0xff]  ;;  %v4409_v34 = vpack.c.bf16 %v1836_v26, %v1835_v24 }
 0x736   :  { %v1184_v48 = vpack.c.bf16 %v1181_v45, %v1181_v45  ;;  %v1186_v2 = vpack.c.bf16 %v1183_v0, %v1183_v0  ;;  %v4400_v30 = vpack.c.bf16 %v1862_v28, %v1861_v27  ;;  %v1837_v45 = vld [vmem:[%s4586_s8 + $0x40] sm:$0xff] }
 0x737   :  { %v1185_v37 = vpack.c.bf16 %v1182_v35, %v1182_v35  ;;  %v4415_v35 = vpack.c.bf16 %v1864_v44, %v1863_v33 }
 0x739   :  { %1699 = vmatprep.mubr.bf16.mxu1 %v1185_v37  ;;  %1781 = vmatprep.mubr.bf16.mxu0 %v1185_v37  ;;  %v4418_v37 = vpack.c.bf16 %v1854_v29, %v1853_v40 }
 0x73a   :  { %1700 = vmatmul.mubr.bf16.vlgmr.msra.gmra.mrb[24].mxu1 %v1184_v48  ;;  %1782 = vmatmul.mubr.bf16.vlgmr.msra.gmra.mrb[28].mxu0 %v1184_v48  ;;  %v1866_v48 = vld [vmem:[%s4586_s8 + $0x128] sm:$0xff] }
 0x73b   :  { %1709 = vmatpush1.bf16.msra.mxu1 %v3478_v38  ;;  %3046 = vmatpush3.bf16.msra.mxu0 %v3481_v39  ;;  %v1838_v38 = vld [vmem:[%s4586_s8 + $0x48] sm:$0xff]  ;;  %v1865_v39 = vld [vmem:[%s4586_s8 + $0x120] sm:$0xff] }
 0x73c   :  { %1710 = vmatprep.subr.bf16.mxu1 %v3484_v49  ;;  %3047 = vmatprep.subr.bf16.mxu0 %v3550_v1  ;;  %v1855_v49 = vld [vmem:[%s4586_s8 + $0xd0] sm:$0xff] }
 0x73d   :  { %1740 = vmatprep.mubr.bf16.mxu1 %v3553_v9  ;;  %3061 = vmatprep.mubr.msk.bf16.mxu0 %vm3551_vm0, %v3550_v1 }
 0x73f   :  { %1711 = vmatpush1.bf16.msra.mxu1 %v3482_v50  ;;  %3048 = vmatpush3.bf16.msra.mxu0 %v3485_v51  ;;  %v1856_v50 = vld [vmem:[%s4586_s8 + $0xd8] sm:$0xff]  ;;  %v4437_v51 = vpack.c.bf16 %v1838_v38, %v1837_v45  ;;  %v3510_v45 = vld [vmem:[%s4587_s9] ss:$12 sps:$4 sm:$0xff]  }
 0x740   :  { %1712 = vmatprep.subr.bf16.mxu1 %v3488_v54  ;;  %3049 = vmatprep.subr.bf16.mxu0 %v3550_v1  ;;  %v1839_v54 = vld [vmem:[%s4586_s8 + $0x50] sm:$0xff] }
 0x743   :  { %1713 = vmatpush1.bf16.msra.mxu1 %v3486_v12  ;;  %3050 = vmatpush3.bf16.msra.mxu0 %v3489_v31  ;;  %v3312_v12 = vpack.c.bf16 %v1866_v48, %v1865_v39  ;;  %v4444_v31 = vpack.c.bf16 %v1856_v50, %v1855_v49  ;;  %v3516_v39 = vld [vmem:[%s4587_s9 + $0x1c] ss:$12 sps:$4 sm:$0xff]   ;;  %v3514_v48 = vld [vmem:[%s4587_s9 + $0x18] ss:$12 sps:$4 sm:$0xff]   ;;  %v3517_v49 = vld [vmem:[%s4587_s9 + $0x20] ss:$12 sps:$4 sm:$0xff]  }
 0x744   :  { %1714 = vmatprep.subr.bf16.mxu1 %v3492_v32  ;;  %3051 = vmatprep.subr.bf16.mxu0 %v3550_v1  ;;  %v1840_v32 = vld [vmem:[%s4586_s8 + $0x58] sm:$0xff] }
 0x747   :  { %1715 = vmatpush1.bf16.msra.mxu1 %v3490_v36  ;;  %3052 = vmatpush3.bf16.msra.mxu0 %v3493_v41  ;;  %v1867_v36 = vld [vmem:[%s4586_s8 + $0x130] sm:$0xff]  ;;  %v1868_v41 = vld [vmem:[%s4586_s8 + $0x138] sm:$0xff] }
 0x748   :  { %1716 = vmatprep.subr.bf16.mxu1 %v3496_v42  ;;  %3053 = vmatprep.subr.bf16.mxu0 %v3550_v1  ;;  %v1857_v42 = vld [vmem:[%s4586_s8 + $0xe0] sm:$0xff] }
 0x74b   :  { %1717 = vmatpush1.bf16.msra.mxu1 %v3494_v47  ;;  %3054 = vmatpush3.bf16.msra.mxu0 %v3497_v52  ;;  %v1858_v47 = vld [vmem:[%s4586_s8 + $0xe8] sm:$0xff]  ;;  %v4463_v52 = vpack.c.bf16 %v1840_v32, %v1839_v54 }
 0x74c   :  { %1718 = vmatprep.subr.bf16.mxu1 %v3500_v53  ;;  %3055 = vmatprep.subr.bf16.mxu0 %v3550_v1  ;;  %v3315_v53 = vpack.c.bf16 %v1868_v41, %v1867_v36 }
 0x74f   :  { %1719 = vmatpush1.bf16.msra.mxu1 %v3498_v55  ;;  %3056 = vmatpush3.bf16.msra.mxu0 %v3501_v56  ;;  %v3297_v55 = vpack.c.bf16 %v1858_v47, %v1857_v42  ;;  %v1841_v56 = vld [vmem:[%s4586_s8 + $0x60] sm:$0xff] }
 0x750   :  { %1720 = vmatprep.subr.bf16.mxu1 %v3504_v57  ;;  %3057 = vmatprep.subr.bf16.mxu0 %v3550_v1  ;;  %v1842_v57 = vld [vmem:[%s4586_s8 + $0x68] sm:$0xff]  ;;  %v3525_v42 = vld [vmem:[%s4588_s10 + $0x1] ss:$0 sm:$0xff] }
 0x751   :  { %v3299_v60 = vpack.c.bf16 %v1842_v57, %v1841_v56 }
 0x753   :  { %1721 = vmatpush1.bf16.msra.mxu1 %v3502_v58  ;;  %3058 = vmatpush3.bf16.msra.mxu0 %v3505_v59  ;;  %v1859_v58 = vld [vmem:[%s4586_s8 + $0xf0] sm:$0xff]  ;;  %v1860_v59 = vld [vmem:[%s4586_s8 + $0xf8] sm:$0xff] }
 0x754   :  { %1722 = vmatprep.subr.bf16.mxu1 %v3508_v61  ;;  %3059 = vmatprep.subr.bf16.mxu0 %v3550_v1  ;;  %v3301_v61 = vpack.c.bf16 %v1860_v59, %v1859_v58 }
 0x757   :  { %1723 = vmatpush1.bf16.msra.mxu1 %v3506_v62  ;;  %3060 = vmatpush3.bf16.msra.mxu0 %v3509_v63  ;;  %v1843_v62 = vld [vmem:[%s4586_s8 + $0x70] sm:$0xff]  ;;  %v1844_v63 = vld [vmem:[%s4586_s8 + $0x78] sm:$0xff] }
 0x758   :  { %3305 = vmatprep.subr.bf16.mxu1 %v3552_v6  ;;  %3274 = vmatprep.subr.bf16.mxu0 %v4327_v5  ;;  %v3303_v0 = vpack.c.bf16 %v1844_v63, %v1843_v62 }
 0x75a   :  { %1741 = vmatmul.mubr.bf16.vlgmr.msra.gmra.mrb[24].mxu1 %v1186_v2  ;;  %3062 = vmatmul.mubr.bf16.vlgmr.msra.gmra.mrb[32].mxu0 %v1186_v2 }
 0x75b   :  { %3081 = vmatprep.mubr.msk.f32.mxu1 %vm3551_vm0, %v3550_v1  ;;  %3276 = vmatpush3.bf16.msra.mxu0 %v4335_v10 }
 0x75c   :  { %3278 = vmatprep.subr.bf16.mxu0 %v4348_v14  ;;  %3307 = vmatpush3.bf16.msra.mxu1 %v4400_v30 }
 0x75d   :  { %3308 = vmatprep.subr.bf16.mxu1 %v3552_v6 }
 0x75f   :  { %3280 = vmatpush3.bf16.msra.mxu0 %v4359_v18 }
 0x760   :  { %3282 = vmatprep.subr.bf16.mxu0 %v4361_v19  ;;  %3310 = vmatpush3.bf16.msra.mxu1 %v4415_v35 }
 0x761   :  { %3311 = vmatprep.subr.bf16.mxu1 %v3552_v6 }
 0x763   :  { %3284 = vmatpush3.bf16.msra.mxu0 %v4377_v23 }
 0x764   :  { %3286 = vmatprep.subr.bf16.mxu0 %v4383_v25  ;;  %3313 = vmatpush3.bf16.msra.mxu1 %v3312_v12 }
 0x765   :  { %3314 = vmatprep.subr.bf16.mxu1 %v3552_v6 }
 0x767   :  { %3288 = vmatpush3.bf16.msra.mxu0 %v4409_v34 }
 0x768   :  { %3290 = vmatprep.subr.bf16.mxu0 %v4418_v37  ;;  %3316 = vmatpush3.bf16.msra.mxu1 %v3315_v53 }
 0x769   :  { %3349 = vmatprep.subr.bf16.mxu1 %v3552_v6 }
 0x76b   :  { %3292 = vmatpush3.bf16.msra.mxu0 %v4437_v51 }
 0x76c   :  { %3294 = vmatprep.subr.bf16.mxu0 %v4444_v31 }
 0x76f   :  { %3296 = vmatpush3.bf16.msra.mxu0 %v4463_v52 }
 0x770   :  { %3298 = vmatprep.subr.bf16.mxu0 %v3297_v55 }
 0x773   :  { %3300 = vmatpush3.bf16.msra.mxu0 %v3299_v60 }
 0x774   :  { %3302 = vmatprep.subr.bf16.mxu0 %v3301_v61 }
 0x777   :  { %3304 = vmatpush3.bf16.msra.mxu0 %v3303_v0 }
 0x778   :  { %3318 = vmatprep.subr.bf16.mxu0 %v4327_v5 }
 0x80d   :  { %v2750_v2 = vpop.f32.mrb[28].mxu0 }
 0x80e   :  { %v2751_v3 = vpop.f32.mrb[29].mxu0 }
 0x80f   :  { %v2752_v4 = vadd.f32 %v2751_v3, %v2750_v2  ;;  %v2753_v7 = vpop.f32.mrb[30].mxu0 }
 0x810   :  { %v2754_v8 = vpop.f32.mrb[31].mxu0 }
 0x82d   :  { %v4488_v11 = vpop.f32.mrb[24].mxu1  ;;  %v1823_v13 = vpop.f32.mrb[32].mxu0 }
 0x82e   :  { %v4490_v43 = vadd.f32 %v2752_v4, %v1823_v13  ;;  %v4492_v15 = vpop.f32.mrb[25].mxu1  ;;  %v3063_v16 = vpop.f32.mrb[33].mxu0 }
 0x82f   :  { %v2014_v17 = vmul.f32 %v4492_v15, %v4492_v15  ;;  %v1746_v46 = vpop.f32.mrb[26].mxu1  ;;  %v1826_v20 = vpop.f32.mrb[34].mxu0  ;;  %1937 = vmatprep.mubr.f32.mxu0 %v4492_v15 }
 0x830   :  { %v1747_v5 = vpop.f32.mrb[27].mxu1  ;;  %v3064_v21 = vpop.f32.mrb[35].mxu0  ;;  %1938 = vmatmul.mubr.f32.vlgmr.msra.gmra.mrb[18].mxu0 %v4488_v11  ;;  %3082 = vmatmul.mubr.msk.f32.vlgmr.msra.gmra.mrb[14].mxu1 %vm1869_vm5, %v4490_v43 }
 0x831   :  { %3320 = vmatpush3.bf16.msra.mxu0 %v4335_v10  ;;  %3351 = vmatpush3.bf16.msra.mxu1 %v4400_v30  ;;  %v2015_v10 = vmul.f32 %v4490_v43, %v4490_v43 }
 0x832   :  { %2083 = vmatprep.mubr.f32.mxu0 %v2014_v17  ;;  %3322 = vmatprep.subr.bf16.mxu0 %v4348_v14 }
 0x833   :  { %3352 = vmatprep.subr.bf16.mxu1 %v3552_v6  ;;  %3100 = vmatprep.mubr.msk.f32.mxu1 %vm3551_vm0, %v3550_v1 }
 0x835   :  { %3324 = vmatpush3.bf16.msra.mxu0 %v4359_v18  ;;  %3354 = vmatpush3.bf16.msra.mxu1 %v4415_v35  ;;  %v3512_v35 = vld [vmem:[%s4587_s9 + $0x4] ss:$12 sps:$4 sm:$0xff]  }
 0x836   :  { %3326 = vmatprep.subr.bf16.mxu0 %v4361_v19  ;;  %3355 = vmatprep.subr.bf16.mxu1 %v3552_v6 }
 0x839   :  { %3328 = vmatpush3.bf16.msra.mxu0 %v4377_v23  ;;  %3357 = vmatpush3.bf16.msra.mxu1 %v3312_v12 }
 0x83a   :  { %3330 = vmatprep.subr.bf16.mxu0 %v4383_v25  ;;  %3358 = vmatprep.subr.bf16.mxu1 %v3552_v6  ;;  %v2013_v6 = vmul.f32 %v4488_v11, %v4488_v11 }
 0x83d   :  { %3332 = vmatpush3.bf16.msra.mxu0 %v4409_v34  ;;  %3360 = vmatpush3.bf16.msra.mxu1 %v3315_v53 }
 0x83e   :  { %3334 = vmatprep.subr.bf16.mxu0 %v4418_v37  ;;  %v3513_v37 = vld [vmem:[%s4587_s9 + $0x8] ss:$12 sps:$4 sm:$0xff]   ;;  %2226 = vmatprep.subr.bf16.mxu1 %v3512_v35 }
 0x840   :  { %3101 = vmatmul.mubr.msk.f32.vlgmr.msra.gmra.mrb[28].mxu1 %vm1869_vm5, %v2015_v10 }
 0x841   :  { %3336 = vmatpush3.bf16.msra.mxu0 %v4437_v51  ;;  %2258 = vmatprep.mubr.bf16.mxu1 %v3553_v9  ;;  %v3524_v51 = vld [vmem:[%s4588_s10] ss:$0 sm:$0xff]  ;;  %s3558_s10 = smov 64  }
 0x842   :  { %3338 = vmatprep.subr.bf16.mxu0 %v4444_v31  ;;  %2227 = vmatpush1.bf16.msra.mxu1 %v3510_v45 }
 0x843   :  { %2228 = vmatprep.subr.bf16.mxu1 %v3516_v39 }
 0x845   :  { %3340 = vmatpush3.bf16.msra.mxu0 %v4463_v52 }
 0x846   :  { %3342 = vmatprep.subr.bf16.mxu0 %v3297_v55  ;;  %2229 = vmatpush1.bf16.msra.mxu1 %v3514_v48 }
 0x847   :  { %2314 = vmatprep.subr.bf16.mxu1 %v3512_v35 }
 0x849   :  { %3344 = vmatpush3.bf16.msra.mxu0 %v3299_v60 }
 0x84a   :  { %3346 = vmatprep.subr.bf16.mxu0 %v3301_v61 }
 0x84d   :  { %3348 = vmatpush3.bf16.msra.mxu0 %v3303_v0 }
 0x84e   :  { %3103 = vmatprep.subr.bf16.mxu0 %v3550_v1 }
 0x850   :  { %2084 = vmatmul.mubr.f32.vlgmr.msra.gmra.mrb[36].mxu0 %v2013_v6 }
 0x851   :  { %3107 = vmatprep.mubr.msk.bf16.mxu0 %vm3551_vm0, %v3550_v1  ;;  %3104 = vmatpush3.bf16.msra.mxu0 %v3513_v37 }
 0x852   :  { %3105 = vmatprep.subr.bf16.mxu0 %v3550_v1 }
 0x855   :  { %3106 = vmatpush3.bf16.msra.mxu0 %v3517_v49 }
 0x856   :  { %3111 = vmatprep.subr.bf16.mxu0 %v3550_v1 }
 0x903   :  { %v2797_v14 = vpop.f32.mrb[18].mxu0  ;;  %v2009_v18 = vpop.f32.mrb[14].mxu1 }
 0x904   :  { %v2798_v19 = vpop.f32.mrb[19].mxu0  ;;  %v3083_v22 = vpop.f32.mrb[15].mxu1 }
 0x905   :  { %v2799_v23 = vadd.f32 %v2798_v19, %v2797_v14 }
 0x907   :  { %v2010_v24 = vadd.f32 %v2799_v23, %v2009_v18 }
 0x909   :  { %v2159_v29 = vmul.f32 %v2010_v24, %v2010_v24 }
 0x913   :  { %v2155_v25 = vpop.f32.mrb[28].mxu1 }
 0x914   :  { %v3102_v26 = vpop.f32.mrb[29].mxu1 }
 0x923   :  { %v2841_v27 = vpop.f32.mrb[36].mxu0 }
 0x924   :  { %v2842_v28 = vpop.f32.mrb[37].mxu0 }
 0x925   :  { %v2843_v40 = vadd.f32 %v2842_v28, %v2841_v27 }
 0x927   :  { %v2156_v30 = vadd.f32 %v2843_v40, %v2155_v25 }
 0x929   :  { %v2160_v33 = vsub.f32 %v2156_v30, %v2159_v29 }
 0x92b   :  { %v2161_v44 = vmax.f32 %v2160_v33, 0.0 }
 0x92d   :  { %v2162_v34 = vadd.f32 1e-05, %v2161_v44 }
 0x92f   :  { %3522 = vrsqrt.f32 %v2162_v34 }
 0x939   :  { %v3523_v38 = vpop.eup %3522 }
 0x93a   :  { %2165 = vrot.lane.b32.xlu1 %v3523_v38, %s3556_s4 }
 0x9ac   :  { %v2166_v50 = vpop.permute.xlu1 %2165 }
 0x9ad   :  { %v2168_v54 = vmul.f32 %v3524_v51, %v2166_v50 }
 0x9af   :  { %2170 = vrot.lane.b32.xlu0 %v2168_v54, %s3557_s6  ;;  %v2187_v12 = vpack.c.bf16 %v2168_v54, %v2168_v54 }
 0x9b3   :  { %2189 = vrot.lane.b32.xlu0 %v2187_v12, %s3557_s6 }
 0xa21   :  { %v2171_v31 = vpop.permute.xlu0 %2170 }
 0xa22   :  { %v2173_v32 = vmul.f32 %v2171_v31, %v2010_v24 }
 0xa24   :  { %2175 = vrot.lane.b32.xlu1 %v2173_v32, %s3556_s4 }
 0xa25   :  { %v2190_v36 = vpop.permute.xlu0 %2189 }
 0xa26   :  { %2575 = vmatmul.mubr.msk.bf16.vlgmr.msra.gmra.mrb[32].mxu1 %vm58_vm1, %v2190_v36  ;;  %3108 = vmatmul.mubr.msk.bf16.vlgmr.msra.gmra.mrb[40].mxu0 %vm58_vm1, %v2190_v36 }
 0xa27   :  { %2315 = vmatpush1.bf16.msra.mxu1 %v3510_v45  ;;  %3112 = vmatpush3.bf16.msra.mxu0 %v3513_v37 }
 0xa28   :  { %2316 = vmatprep.subr.bf16.mxu1 %v3516_v39  ;;  %3113 = vmatprep.subr.bf16.mxu0 %v3550_v1 }
 0xa29   :  { %2346 = vmatprep.mubr.bf16.mxu1 %v3553_v9  ;;  %3115 = vmatprep.mubr.msk.bf16.mxu0 %vm3551_vm0, %v3550_v1 }
 0xa2b   :  { %2317 = vmatpush1.bf16.msra.mxu1 %v3514_v48  ;;  %3114 = vmatpush3.bf16.msra.mxu0 %v3517_v49 }
 0xa96   :  { %v2176_v41 = vpop.permute.xlu1 %2175 }
 0xa97   :  { %v2178_v47 = vsub.f32 %v3525_v42, %v2176_v41 }
 0xa99   :  { %v2307_v52 = vpack.c.bf16 %v2178_v47, %v2178_v47 }
 0xa9b   :  { %2309 = vrot.lane.b32.xlu1 %v2307_v52, %s3557_s6 }
 0xaf9   :  { %v2260_v53 = vpop.f32.mrb[32].mxu1  ;;  %v2301_v55 = vpop.f32.mrb[40].mxu0 }
 0xafa   :  { %v2395_v56 = vmul.f32 %v2260_v53, %v4488_v11  ;;  %v2262_v57 = vpop.f32.mrb[33].mxu1  ;;  %v3109_v58 = vpop.f32.mrb[41].mxu0  ;;  %v2397_v63 = vmul.f32 %v2301_v55, %v4490_v43 }
 0xafb   :  { %v2396_v9 = vmul.f32 %v2262_v57, %v4492_v15  ;;  %v2264_v59 = vpop.f32.mrb[34].mxu1  ;;  %v2304_v1 = vpop.f32.mrb[42].mxu0 }
 0xafc   :  { %v2265_v60 = vpop.f32.mrb[35].mxu1  ;;  %v3110_v61 = vpop.f32.mrb[43].mxu0 }
 0xb0d   :  { %v2310_v62 = vpop.permute.xlu1 %2309 }
 0xb0e   :  { %2577 = vmatmul.mubr.msk.bf16.vlgmr.msra.gmra.mrb[36].mxu1 %vm58_vm1, %v2310_v62  ;;  %3116 = vmatmul.mubr.msk.bf16.vlgmr.msra.gmra.mrb[44].mxu0 %vm58_vm1, %v2310_v62 }
 0xbe1   :  { %v2348_v0 = vpop.f32.mrb[36].mxu1  ;;  %v2389_v2 = vpop.f32.mrb[44].mxu0 }
 0xbe2   :  { %v2398_v3 = vadd.f32 %v2395_v56, %v2348_v0  ;;  %v2400_v4 = vadd.f32 %v2397_v63, %v2389_v2  ;;  %v2350_v7 = vpop.f32.mrb[37].mxu1  ;;  %v3117_v8 = vpop.f32.mrb[45].mxu0 }
 0xbe3   :  { %v2399_v11 = vadd.f32 %v2396_v9, %v2350_v7  ;;  %v2352_v13 = vpop.f32.mrb[38].mxu1  ;;  %v2392_v15 = vpop.f32.mrb[46].mxu0 }
 0xbe4   :  { %v2401_v16 = vmul.f32 0.1, %v2398_v3  ;;  %v2353_v17 = vpop.f32.mrb[39].mxu1  ;;  %v3118_v46 = vpop.f32.mrb[47].mxu0  ;;  %v2403_v5 = vmul.f32 0.1, %v2400_v4 }
 0xbe5   :  { %v2402_v21 = vmul.f32 0.1, %v2399_v11 }
 0xbe6   :  { %v2404_v20 = vmax.f32 %v2398_v3, %v2401_v16  ;;  %v2406_v43 = vmax.f32 %v2400_v4, %v2403_v5 }
 0xbe7   :  { %v2405_v10 = vmax.f32 %v2399_v11, %v2402_v21 }
 0xbe8   :  { %2423 = vrot.lane.b32.xlu1 %v2404_v20, %s3558_s10  ;;  %2410 = vrot.lane.b32.xlu0 %v2404_v20, %s3559_s22 }
 0xbec   :  { %2414 = vrot.lane.b32.xlu0 %v2406_v43, %s3559_s22  ;;  %2412 = vrot.lane.b32.xlu1 %v2405_v10, %s3559_s22 }
 0xbf0   :  { %2425 = vrot.lane.b32.xlu0 %v2405_v10, %s3558_s10  ;;  %2427 = vrot.lane.b32.xlu1 %v2406_v43, %s3558_s10 }
 0xc5a   :  { %v2424_v6 = vpop.permute.xlu1 %2423  ;;  %v2411_v14 = vpop.permute.xlu0 %2410 }
 0xc5e   :  { %v2415_v18 = vpop.permute.xlu0 %2414  ;;  %v2413_v19 = vpop.permute.xlu1 %2412 }
 0xc5f   :  { %v2417_v22 = vsel %vm2416_vm6, %v2411_v14, %v2413_v19  ;;  %v2418_v23 = vsel %vm2416_vm6, %v2413_v19, %v2415_v18 }
 0xc60   :  { %v2421_v24 = vadd.f32 %v2417_v22, %v2404_v20  ;;  %v2422_v25 = vadd.f32 %v2418_v23, %v2405_v10 }
 0xc62   :  { %v2426_v26 = vpop.permute.xlu0 %2425  ;;  %v2428_v27 = vpop.permute.xlu1 %2427 }
 0xc63   :  { %v2429_v28 = vsel %vm1869_vm5, %v2424_v6, %v2426_v26  ;;  %v2430_v40 = vsel %vm1869_vm5, %v2426_v26, %v2428_v27 }
 0xc64   :  { %v2433_v29 = vadd.f32 %v2429_v28, %v2421_v24  ;;  %v2434_v30 = vadd.f32 %v2430_v40, %v2422_v25 }
 0xc66   :  { %v2435_v33 = vmul.f32 0.33333334, %v2433_v29  ;;  %v2436_v44 = vmul.f32 0.33333334, %v2434_v30 }
 0xc68   :  { %2437 = vst [vmem:[#allocation2] sm:$0xff] %v2435_v33  ;;  %2438 = vst [vmem:[#allocation2 + $0x8] sm:$0xff] %v2436_v44 }
 0xc69   :  { %3537 = shalt.err (!%p3534_p4)
}
 0xc6a   :  { %s3538_s27 = scalar_lea.hbm %s4589_s11, 256 }
 0xc6b   :  { %p3539_p5 = scmp.ne.s32.totalorder %s4589_s11, %s3538_s27  ;;  %p3542_p6 = scmp.lt.u32.totalorder %s3538_s27, %s4589_s11 }
 0xc6d   :  { %p3544_p7 = pnand %p3542_p6, %p3539_p5 }
 0xc6f   :  { %3547 = shalt.err (!%p3544_p7)
}
 0xc70   :  { %2448 = dma.vmem_to_hbm [thread:$0]  %s2446_s24, 256, %s4589_s11, [#allocation3]  }
 0xc71   :  { %3548 = dma.done.wait [#allocation3], 256  }
 0xc72   :  { %3549 = vsyncadd [#allocation3], 4294967040 }
 0xc73   :  { %2452 = vsyncpa [#allocation3], 1 }

</bundles_post_ra>
